<compile_context>
chip_gen: v6e
topology: v6e:2x2x1
jax: 0.10.0
libtpu: 0.0.40
codegen_flags: <defaults>
</compile_context>

<pallas_src>
import numpy as np
import jax
import jax.numpy as jnp
from jax.experimental import pallas as pl
from jax.experimental.pallas import tpu as pltpu


def _lstm2_kernel(x_ref,     # (B*S,) int32 in SMEM, row-major over (b, t)
                  tbl_ref,   # (V+1, 4H) f32: rows 0..V-1 = emb@W_ih0^T + b0 ; row V = b1
                  w_ref,     # (2H, 8H) bf16: [[whh0, wih1], [0, whh1]]  (gate cols [i,f,o,g])
                  out_ref):  # (B, H)  f32
    B, H = out_ref.shape
    S = x_ref.shape[0] // B
    H4 = 4 * H

    w = w_ref[...]                                           # (2H, 8H) bf16
    b1 = tbl_ref[pl.ds(tbl_ref.shape[0] - 1, 1), :]          # (1, 4H) f32 (static last row)

    # Gate order is [i, f, o, g]: sigmoid lanes [0, 3H), tanh lanes [3H, 4H).
    lane = jax.lax.broadcasted_iota(jnp.int32, (B, H4), 1)
    sig_mask = lane < 3 * H

    def activate(g):
        # Full-vreg activations + mask select (no sub-vreg slab slicing before the EUP ops).
        act = jnp.where(sig_mask, jax.nn.sigmoid(g), jnp.tanh(g))
        return act[:, :H], act[:, H:2 * H], act[:, 2 * H:3 * H], act[:, 3 * H:]

    rec0 = jnp.zeros((B, H4), jnp.float32)      # h0(t-1) @ whh0 (zero at t=0)
    c0 = jnp.zeros((B, H), jnp.float32)
    c1 = jnp.zeros((B, H), jnp.float32)
    h1_bf = jnp.zeros((B, H), jnp.bfloat16)
    h1_f32 = jnp.zeros((B, H), jnp.float32)

    # Static unroll: S is a small Python int.
    # TODO(synk): switch to lax.fori_loop(..., unroll=2) if S grows past ~16 (bounds live ranges).
    for t in range(S):
        # ---- layer 0: gather precomputed input-side gates (embedding + W_ih0 + bias folded) ----
        rows = [tbl_ref[pl.ds(x_ref[b * S + t], 1), :] for b in range(B)]
        gx0 = jnp.concatenate(rows, axis=0)                  # (B, 4H) f32
        g0 = gx0 + rec0
        i0, f0, o0, gg0 = activate(g0)
        c0 = f0 * c0 + i0 * gg0
        h0_bf = (o0 * jnp.tanh(c0)).astype(jnp.bfloat16)

        # ---- single fused matmul for both layers ----
        #   left 4H  : h0(t) @ whh0            -> layer-0 recurrent term for step t+1
        #   right 4H : h0(t)@wih1 + h1(t-1)@whh1 -> layer-1 gate pre-activations for step t
        hh = jnp.concatenate([h0_bf, h1_bf], axis=1)          # (B, 2H) bf16
        comb = jnp.dot(hh, w, preferred_element_type=jnp.float32)   # (B, 8H) f32
        rec0 = comb[:, :H4]

        g1 = comb[:, H4:] + b1
        i1, f1, o1, gg1 = activate(g1)
        c1 = f1 * c1 + i1 * gg1
        h1_f32 = o1 * jnp.tanh(c1)
        h1_bf = h1_f32.astype(jnp.bfloat16)

    out_ref[...] = h1_f32


def rnn_base_forward(x_idx, params):
    """x_idx: (B, S) int32 token ids.  Returns (B, n_hidden) f32 == out[:, -1, :]."""
    B, S = x_idx.shape
    H = params["n_hidden"]
    x_flat = x_idx.reshape(B * S).astype(jnp.int32)

    # TODO(synk): for large B on v7x, add a leading batch grid axis with
    # dimension_semantics=("parallel",) to use both TensorCores.
    out = pl.pallas_call(
        _lstm2_kernel,
        out_shape=jax.ShapeDtypeStruct((B, H), jnp.float32),
        in_specs=[
            pl.BlockSpec(memory_space=pltpu.MemorySpace.SMEM),   # token ids
            pl.BlockSpec(memory_space=pltpu.MemorySpace.VMEM),   # gather table (+ b1 row)
            pl.BlockSpec(memory_space=pltpu.MemorySpace.VMEM),   # fused recurrent weights
        ],
        out_specs=pl.BlockSpec(memory_space=pltpu.MemorySpace.VMEM),
    )(x_flat, params["table"], params["w_comb"])
    return out


def init_params(key, num_classes, n_hidden, embed_dim=8):
    """PyTorch-shaped init (uniform +-1/sqrt(H)); returns kernel-layout params plus raw
    PyTorch-layout copies for the pure-JAX reference."""
    H, E = n_hidden, embed_dim
    ks = jax.random.split(key, 9)
    bound = 1.0 / np.sqrt(H)
    u = lambda k, shape: jax.random.uniform(k, shape, jnp.float32, -bound, bound)

    emb = jax.random.normal(ks[0], (num_classes, E), jnp.float32)   # nn.Embedding ~ N(0,1)

    wih0 = u(ks[1], (4 * H, E)); whh0 = u(ks[2], (4 * H, H))
    bih0 = u(ks[3], (4 * H,));   bhh0 = u(ks[4], (4 * H,))
    wih1 = u(ks[5], (4 * H, H)); whh1 = u(ks[6], (4 * H, H))
    bih1 = u(ks[7], (4 * H,));   bhh1 = u(ks[8], (4 * H,))

    def reorder(w):
        # PyTorch gate order [i, f, g, o] along last dim -> kernel order [i, f, o, g]
        return jnp.concatenate(
            [w[..., :2 * H], w[..., 3 * H:], w[..., 2 * H:3 * H]], axis=-1)

    # Layer-0 input path folded into an f32 gather table; last row carries the layer-1 bias.
    table = reorder(emb @ wih0.T + bih0 + bhh0)              # (V, 4H) f32
    b1 = reorder((bih1 + bhh1)[None, :])                     # (1, 4H) f32
    table_ext = jnp.concatenate([table, b1], axis=0)         # (V+1, 4H) f32

    whh0_k = reorder(whh0.T)                                 # (H, 4H)
    wih1_k = reorder(wih1.T)                                 # (H, 4H)
    whh1_k = reorder(whh1.T)                                 # (H, 4H)
    w_comb = jnp.concatenate(
        [jnp.concatenate([whh0_k, wih1_k], axis=1),
         jnp.concatenate([jnp.zeros((H, 4 * H), jnp.float32), whh1_k], axis=1)],
        axis=0).astype(jnp.bfloat16)                         # (2H, 8H)

    return {
        "n_hidden": H,
        "table": table_ext,
        "w_comb": w_comb,
        "embedding": emb,
        "_torch": {"wih0": wih0, "whh0": whh0, "bih0": bih0, "bhh0": bhh0,
                   "wih1": wih1, "whh1": whh1, "bih1": bih1, "bhh1": bhh1},
    }


def _reference_forward(x_idx, params):
    """Pure-JAX f32 reference in native PyTorch layout / gate order (i, f, g, o)."""
    t = params["_torch"]
    emb = params["embedding"][x_idx]          # (B, S, E)
    B, S, _ = emb.shape
    H = t["whh0"].shape[1]

    def cell(x, h, c, wih, whh, bih, bhh):
        g = x @ wih.T + h @ whh.T + bih + bhh
        i = jax.nn.sigmoid(g[:, 0 * H:1 * H])
        f = jax.nn.sigmoid(g[:, 1 * H:2 * H])
        gg = jnp.tanh(g[:, 2 * H:3 * H])
        o = jax.nn.sigmoid(g[:, 3 * H:4 * H])
        c = f * c + i * gg
        h = o * jnp.tanh(c)
        return h, c

    h0 = c0 = h1 = c1 = jnp.zeros((B, H), jnp.float32)
    for s in range(S):
        h0, c0 = cell(emb[:, s, :], h0, c0, t["wih0"], t["whh0"], t["bih0"], t["bhh0"])
        h1, c1 = cell(h0, h1, c1, t["wih1"], t["whh1"], t["bih1"], t["bhh1"])
    return h1


if __name__ == "__main__":
    num_classes = 65    # Shakespeare char vocab
    n_hidden = 32
    batch, seq = 2, 8

    key = jax.random.PRNGKey(0)
    k_param, k_data = jax.random.split(key)
    params = init_params(k_param, num_classes, n_hidden)
    x_idx = jax.random.randint(k_data, (batch, seq), 0, num_classes, dtype=jnp.int32)

    out = jax.block_until_ready(rnn_base_forward(x_idx, params))
    ref = jax.block_until_ready(_reference_forward(x_idx, params))

    assert out.shape == (batch, n_hidden)
    # Only the recurrent matmuls use bf16 (input path is an f32 table) -> small error.
    np.testing.assert_allclose(np.asarray(out), np.asarray(ref), rtol=3e-2, atol=3e-2)
    print("KERNEL_OK")
</pallas_src>

<mosaic_0001>
module attributes {stable_mosaic.version = 11 : i64} {
  func.func @_lstm2_kernel(%arg0: memref<16xi32, #tpu.memory_space<smem>>, %arg1: memref<66x128xf32, #tpu.memory_space<vmem>>, %arg2: memref<64x256xbf16, #tpu.memory_space<vmem>>, %arg3: memref<2x32xf32, #tpu.memory_space<vmem>>) attributes {dimension_semantics = [], scalar_prefetch = 0 : i64, scratch_operands = 0 : i64, tpu.core_type = #tpu.core_type<tc>} {
    %c0 = arith.constant 0 : index
    %c0_0 = arith.constant 0 : index
    %0 = vector.load %arg2[%c0, %c0_0] : memref<64x256xbf16, #tpu.memory_space<vmem>>, vector<64x256xbf16>
    %c65 = arith.constant 65 : index
    %c0_1 = arith.constant 0 : index
    %1 = vector.load %arg1[%c65, %c0_1] : memref<66x128xf32, #tpu.memory_space<vmem>>, vector<1x128xf32>
    %2 = tpu.iota {dimensions = array<i32: 1>} : vector<2x128xi32>
    %c96_i32 = arith.constant 96 : i32
    %3 = vector.broadcast %c96_i32 : i32 to vector<2x128xi32>
    %4 = arith.cmpi slt, %2, %3 : vector<2x128xi32>
    %cst = arith.constant 0.000000e+00 : f32
    %5 = vector.broadcast %cst : f32 to vector<2x128xf32>
    %cst_2 = arith.constant 0.000000e+00 : f32
    %6 = vector.broadcast %cst_2 : f32 to vector<2x32xf32>
    %cst_3 = arith.constant 0.000000e+00 : f32
    %7 = vector.broadcast %cst_3 : f32 to vector<2x32xf32>
    %cst_4 = arith.constant 0.000000e+00 : bf16
    %8 = vector.broadcast %cst_4 : bf16 to vector<2x32xbf16>
    %c0_5 = arith.constant 0 : index
    %9 = memref.load %arg0[%c0_5] : memref<16xi32, #tpu.memory_space<smem>>
    %10 = arith.index_cast %9 : i32 to index
    %c0_6 = arith.constant 0 : index
    %11 = vector.load %arg1[%10, %c0_6] : memref<66x128xf32, #tpu.memory_space<vmem>>, vector<1x128xf32>
    %c8 = arith.constant 8 : index
    %12 = memref.load %arg0[%c8] : memref<16xi32, #tpu.memory_space<smem>>
    %13 = arith.index_cast %12 : i32 to index
    %c0_7 = arith.constant 0 : index
    %14 = vector.load %arg1[%13, %c0_7] : memref<66x128xf32, #tpu.memory_space<vmem>>, vector<1x128xf32>
    %15 = tpu.concatenate %11, %14 in 0 : vector<1x128xf32>, vector<1x128xf32> -> vector<2x128xf32>
    %16 = arith.addf %15, %5 : vector<2x128xf32>
    %17 = arith.negf %16 : vector<2x128xf32>
    %18 = math.exp %17 : vector<2x128xf32>
    %cst_8 = arith.constant 1.000000e+00 : f32
    %19 = vector.broadcast %cst_8 : f32 to vector<2x128xf32>
    %20 = arith.addf %19, %18 : vector<2x128xf32>
    %21 = arith.divf %19, %20 : vector<2x128xf32>
    %22 = math.tanh %16 : vector<2x128xf32>
    %23 = arith.select %4, %21, %22 : vector<2x128xi1>, vector<2x128xf32>
    %24 = vector.extract_strided_slice %23 {offsets = [0, 0], sizes = [2, 32], strides = [1, 1]} : vector<2x128xf32> to vector<2x32xf32>
    %25 = vector.extract_strided_slice %23 {offsets = [0, 32], sizes = [2, 32], strides = [1, 1]} : vector<2x128xf32> to vector<2x32xf32>
    %26 = vector.extract_strided_slice %23 {offsets = [0, 64], sizes = [2, 32], strides = [1, 1]} : vector<2x128xf32> to vector<2x32xf32>
    %27 = vector.extract_strided_slice %23 {offsets = [0, 96], sizes = [2, 32], strides = [1, 1]} : vector<2x128xf32> to vector<2x32xf32>
    %28 = arith.mulf %25, %6 : vector<2x32xf32>
    %29 = arith.mulf %24, %27 : vector<2x32xf32>
    %30 = arith.addf %28, %29 : vector<2x32xf32>
    %31 = math.tanh %30 : vector<2x32xf32>
    %32 = arith.mulf %26, %31 : vector<2x32xf32>
    %33 = arith.truncf %32 : vector<2x32xf32> to vector<2x32xbf16>
    %34 = tpu.concatenate %33, %8 in 1 : vector<2x32xbf16>, vector<2x32xbf16> -> vector<2x64xbf16>
    %cst_9 = arith.constant dense<0.000000e+00> : vector<2x256xf32>
    %35 = tpu.matmul %34, %0, %cst_9 {dimension_numbers = #tpu.dot_dimension_numbers<[1], [0], [0], [1], [0, 0, 1, 1], [], []>} : vector<2x64xbf16>, vector<64x256xbf16>, vector<2x256xf32> -> vector<2x256xf32>
    %36 = vector.extract_strided_slice %35 {offsets = [0, 0], sizes = [2, 128], strides = [1, 1]} : vector<2x256xf32> to vector<2x128xf32>
    %37 = vector.extract_strided_slice %35 {offsets = [0, 128], sizes = [2, 128], strides = [1, 1]} : vector<2x256xf32> to vector<2x128xf32>
    %38 = vector.broadcast %1 : vector<1x128xf32> to vector<2x128xf32>
    %39 = arith.addf %37, %38 : vector<2x128xf32>
    %40 = arith.negf %39 : vector<2x128xf32>
    %41 = math.exp %40 : vector<2x128xf32>
    %cst_10 = arith.constant 1.000000e+00 : f32
    %42 = vector.broadcast %cst_10 : f32 to vector<2x128xf32>
    %43 = arith.addf %42, %41 : vector<2x128xf32>
    %44 = arith.divf %42, %43 : vector<2x128xf32>
    %45 = math.tanh %39 : vector<2x128xf32>
    %46 = arith.select %4, %44, %45 : vector<2x128xi1>, vector<2x128xf32>
    %47 = vector.extract_strided_slice %46 {offsets = [0, 0], sizes = [2, 32], strides = [1, 1]} : vector<2x128xf32> to vector<2x32xf32>
    %48 = vector.extract_strided_slice %46 {offsets = [0, 32], sizes = [2, 32], strides = [1, 1]} : vector<2x128xf32> to vector<2x32xf32>
    %49 = vector.extract_strided_slice %46 {offsets = [0, 64], sizes = [2, 32], strides = [1, 1]} : vector<2x128xf32> to vector<2x32xf32>
    %50 = vector.extract_strided_slice %46 {offsets = [0, 96], sizes = [2, 32], strides = [1, 1]} : vector<2x128xf32> to vector<2x32xf32>
    %51 = arith.mulf %48, %7 : vector<2x32xf32>
    %52 = arith.mulf %47, %50 : vector<2x32xf32>
    %53 = arith.addf %51, %52 : vector<2x32xf32>
    %54 = math.tanh %53 : vector<2x32xf32>
    %55 = arith.mulf %49, %54 : vector<2x32xf32>
    %56 = arith.truncf %55 : vector<2x32xf32> to vector<2x32xbf16>
    %c1 = arith.constant 1 : index
    %57 = memref.load %arg0[%c1] : memref<16xi32, #tpu.memory_space<smem>>
    %58 = arith.index_cast %57 : i32 to index
    %c0_11 = arith.constant 0 : index
    %59 = vector.load %arg1[%58, %c0_11] : memref<66x128xf32, #tpu.memory_space<vmem>>, vector<1x128xf32>
    %c9 = arith.constant 9 : index
    %60 = memref.load %arg0[%c9] : memref<16xi32, #tpu.memory_space<smem>>
    %61 = arith.index_cast %60 : i32 to index
    %c0_12 = arith.constant 0 : index
    %62 = vector.load %arg1[%61, %c0_12] : memref<66x128xf32, #tpu.memory_space<vmem>>, vector<1x128xf32>
    %63 = tpu.concatenate %59, %62 in 0 : vector<1x128xf32>, vector<1x128xf32> -> vector<2x128xf32>
    %64 = arith.addf %63, %36 : vector<2x128xf32>
    %65 = arith.negf %64 : vector<2x128xf32>
    %66 = math.exp %65 : vector<2x128xf32>
    %cst_13 = arith.constant 1.000000e+00 : f32
    %67 = vector.broadcast %cst_13 : f32 to vector<2x128xf32>
    %68 = arith.addf %67, %66 : vector<2x128xf32>
    %69 = arith.divf %67, %68 : vector<2x128xf32>
    %70 = math.tanh %64 : vector<2x128xf32>
    %71 = arith.select %4, %69, %70 : vector<2x128xi1>, vector<2x128xf32>
    %72 = vector.extract_strided_slice %71 {offsets = [0, 0], sizes = [2, 32], strides = [1, 1]} : vector<2x128xf32> to vector<2x32xf32>
    %73 = vector.extract_strided_slice %71 {offsets = [0, 32], sizes = [2, 32], strides = [1, 1]} : vector<2x128xf32> to vector<2x32xf32>
    %74 = vector.extract_strided_slice %71 {offsets = [0, 64], sizes = [2, 32], strides = [1, 1]} : vector<2x128xf32> to vector<2x32xf32>
    %75 = vector.extract_strided_slice %71 {offsets = [0, 96], sizes = [2, 32], strides = [1, 1]} : vector<2x128xf32> to vector<2x32xf32>
    %76 = arith.mulf %73, %30 : vector<2x32xf32>
    %77 = arith.mulf %72, %75 : vector<2x32xf32>
    %78 = arith.addf %76, %77 : vector<2x32xf32>
    %79 = math.tanh %78 : vector<2x32xf32>
    %80 = arith.mulf %74, %79 : vector<2x32xf32>
    %81 = arith.truncf %80 : vector<2x32xf32> to vector<2x32xbf16>
    %82 = tpu.concatenate %81, %56 in 1 : vector<2x32xbf16>, vector<2x32xbf16> -> vector<2x64xbf16>
    %cst_14 = arith.constant dense<0.000000e+00> : vector<2x256xf32>
    %83 = tpu.matmul %82, %0, %cst_14 {dimension_numbers = #tpu.dot_dimension_numbers<[1], [0], [0], [1], [0, 0, 1, 1], [], []>} : vector<2x64xbf16>, vector<64x256xbf16>, vector<2x256xf32> -> vector<2x256xf32>
    %84 = vector.extract_strided_slice %83 {offsets = [0, 0], sizes = [2, 128], strides = [1, 1]} : vector<2x256xf32> to vector<2x128xf32>
    %85 = vector.extract_strided_slice %83 {offsets = [0, 128], sizes = [2, 128], strides = [1, 1]} : vector<2x256xf32> to vector<2x128xf32>
    %86 = vector.broadcast %1 : vector<1x128xf32> to vector<2x128xf32>
    %87 = arith.addf %85, %86 : vector<2x128xf32>
    %88 = arith.negf %87 : vector<2x128xf32>
    %89 = math.exp %88 : vector<2x128xf32>
    %cst_15 = arith.constant 1.000000e+00 : f32
    %90 = vector.broadcast %cst_15 : f32 to vector<2x128xf32>
    %91 = arith.addf %90, %89 : vector<2x128xf32>
    %92 = arith.divf %90, %91 : vector<2x128xf32>
    %93 = math.tanh %87 : vector<2x128xf32>
    %94 = arith.select %4, %92, %93 : vector<2x128xi1>, vector<2x128xf32>
    %95 = vector.extract_strided_slice %94 {offsets = [0, 0], sizes = [2, 32], strides = [1, 1]} : vector<2x128xf32> to vector<2x32xf32>
    %96 = vector.extract_strided_slice %94 {offsets = [0, 32], sizes = [2, 32], strides = [1, 1]} : vector<2x128xf32> to vector<2x32xf32>
    %97 = vector.extract_strided_slice %94 {offsets = [0, 64], sizes = [2, 32], strides = [1, 1]} : vector<2x128xf32> to vector<2x32xf32>
    %98 = vector.extract_strided_slice %94 {offsets = [0, 96], sizes = [2, 32], strides = [1, 1]} : vector<2x128xf32> to vector<2x32xf32>
    %99 = arith.mulf %96, %53 : vector<2x32xf32>
    %100 = arith.mulf %95, %98 : vector<2x32xf32>
    %101 = arith.addf %99, %100 : vector<2x32xf32>
    %102 = math.tanh %101 : vector<2x32xf32>
    %103 = arith.mulf %97, %102 : vector<2x32xf32>
    %104 = arith.truncf %103 : vector<2x32xf32> to vector<2x32xbf16>
    %c2 = arith.constant 2 : index
    %105 = memref.load %arg0[%c2] : memref<16xi32, #tpu.memory_space<smem>>
    %106 = arith.index_cast %105 : i32 to index
    %c0_16 = arith.constant 0 : index
    %107 = vector.load %arg1[%106, %c0_16] : memref<66x128xf32, #tpu.memory_space<vmem>>, vector<1x128xf32>
    %c10 = arith.constant 10 : index
    %108 = memref.load %arg0[%c10] : memref<16xi32, #tpu.memory_space<smem>>
    %109 = arith.index_cast %108 : i32 to index
    %c0_17 = arith.constant 0 : index
    %110 = vector.load %arg1[%109, %c0_17] : memref<66x128xf32, #tpu.memory_space<vmem>>, vector<1x128xf32>
    %111 = tpu.concatenate %107, %110 in 0 : vector<1x128xf32>, vector<1x128xf32> -> vector<2x128xf32>
    %112 = arith.addf %111, %84 : vector<2x128xf32>
    %113 = arith.negf %112 : vector<2x128xf32>
    %114 = math.exp %113 : vector<2x128xf32>
    %cst_18 = arith.constant 1.000000e+00 : f32
    %115 = vector.broadcast %cst_18 : f32 to vector<2x128xf32>
    %116 = arith.addf %115, %114 : vector<2x128xf32>
    %117 = arith.divf %115, %116 : vector<2x128xf32>
    %118 = math.tanh %112 : vector<2x128xf32>
    %119 = arith.select %4, %117, %118 : vector<2x128xi1>, vector<2x128xf32>
    %120 = vector.extract_strided_slice %119 {offsets = [0, 0], sizes = [2, 32], strides = [1, 1]} : vector<2x128xf32> to vector<2x32xf32>
    %121 = vector.extract_strided_slice %119 {offsets = [0, 32], sizes = [2, 32], strides = [1, 1]} : vector<2x128xf32> to vector<2x32xf32>
    %122 = vector.extract_strided_slice %119 {offsets = [0, 64], sizes = [2, 32], strides = [1, 1]} : vector<2x128xf32> to vector<2x32xf32>
    %123 = vector.extract_strided_slice %119 {offsets = [0, 96], sizes = [2, 32], strides = [1, 1]} : vector<2x128xf32> to vector<2x32xf32>
    %124 = arith.mulf %121, %78 : vector<2x32xf32>
    %125 = arith.mulf %120, %123 : vector<2x32xf32>
    %126 = arith.addf %124, %125 : vector<2x32xf32>
    %127 = math.tanh %126 : vector<2x32xf32>
    %128 = arith.mulf %122, %127 : vector<2x32xf32>
    %129 = arith.truncf %128 : vector<2x32xf32> to vector<2x32xbf16>
    %130 = tpu.concatenate %129, %104 in 1 : vector<2x32xbf16>, vector<2x32xbf16> -> vector<2x64xbf16>
    %cst_19 = arith.constant dense<0.000000e+00> : vector<2x256xf32>
    %131 = tpu.matmul %130, %0, %cst_19 {dimension_numbers = #tpu.dot_dimension_numbers<[1], [0], [0], [1], [0, 0, 1, 1], [], []>} : vector<2x64xbf16>, vector<64x256xbf16>, vector<2x256xf32> -> vector<2x256xf32>
    %132 = vector.extract_strided_slice %131 {offsets = [0, 0], sizes = [2, 128], strides = [1, 1]} : vector<2x256xf32> to vector<2x128xf32>
    %133 = vector.extract_strided_slice %131 {offsets = [0, 128], sizes = [2, 128], strides = [1, 1]} : vector<2x256xf32> to vector<2x128xf32>
    %134 = vector.broadcast %1 : vector<1x128xf32> to vector<2x128xf32>
    %135 = arith.addf %133, %134 : vector<2x128xf32>
    %136 = arith.negf %135 : vector<2x128xf32>
    %137 = math.exp %136 : vector<2x128xf32>
    %cst_20 = arith.constant 1.000000e+00 : f32
    %138 = vector.broadcast %cst_20 : f32 to vector<2x128xf32>
    %139 = arith.addf %138, %137 : vector<2x128xf32>
    %140 = arith.divf %138, %139 : vector<2x128xf32>
    %141 = math.tanh %135 : vector<2x128xf32>
    %142 = arith.select %4, %140, %141 : vector<2x128xi1>, vector<2x128xf32>
    %143 = vector.extract_strided_slice %142 {offsets = [0, 0], sizes = [2, 32], strides = [1, 1]} : vector<2x128xf32> to vector<2x32xf32>
    %144 = vector.extract_strided_slice %142 {offsets = [0, 32], sizes = [2, 32], strides = [1, 1]} : vector<2x128xf32> to vector<2x32xf32>
    %145 = vector.extract_strided_slice %142 {offsets = [0, 64], sizes = [2, 32], strides = [1, 1]} : vector<2x128xf32> to vector<2x32xf32>
    %146 = vector.extract_strided_slice %142 {offsets = [0, 96], sizes = [2, 32], strides = [1, 1]} : vector<2x128xf32> to vector<2x32xf32>
    %147 = arith.mulf %144, %101 : vector<2x32xf32>
    %148 = arith.mulf %143, %146 : vector<2x32xf32>
    %149 = arith.addf %147, %148 : vector<2x32xf32>
    %150 = math.tanh %149 : vector<2x32xf32>
    %151 = arith.mulf %145, %150 : vector<2x32xf32>
    %152 = arith.truncf %151 : vector<2x32xf32> to vector<2x32xbf16>
    %c3 = arith.constant 3 : index
    %153 = memref.load %arg0[%c3] : memref<16xi32, #tpu.memory_space<smem>>
    %154 = arith.index_cast %153 : i32 to index
    %c0_21 = arith.constant 0 : index
    %155 = vector.load %arg1[%154, %c0_21] : memref<66x128xf32, #tpu.memory_space<vmem>>, vector<1x128xf32>
    %c11 = arith.constant 11 : index
    %156 = memref.load %arg0[%c11] : memref<16xi32, #tpu.memory_space<smem>>
    %157 = arith.index_cast %156 : i32 to index
    %c0_22 = arith.constant 0 : index
    %158 = vector.load %arg1[%157, %c0_22] : memref<66x128xf32, #tpu.memory_space<vmem>>, vector<1x128xf32>
    %159 = tpu.concatenate %155, %158 in 0 : vector<1x128xf32>, vector<1x128xf32> -> vector<2x128xf32>
    %160 = arith.addf %159, %132 : vector<2x128xf32>
    %161 = arith.negf %160 : vector<2x128xf32>
    %162 = math.exp %161 : vector<2x128xf32>
    %cst_23 = arith.constant 1.000000e+00 : f32
    %163 = vector.broadcast %cst_23 : f32 to vector<2x128xf32>
    %164 = arith.addf %163, %162 : vector<2x128xf32>
    %165 = arith.divf %163, %164 : vector<2x128xf32>
    %166 = math.tanh %160 : vector<2x128xf32>
    %167 = arith.select %4, %165, %166 : vector<2x128xi1>, vector<2x128xf32>
    %168 = vector.extract_strided_slice %167 {offsets = [0, 0], sizes = [2, 32], strides = [1, 1]} : vector<2x128xf32> to vector<2x32xf32>
    %169 = vector.extract_strided_slice %167 {offsets = [0, 32], sizes = [2, 32], strides = [1, 1]} : vector<2x128xf32> to vector<2x32xf32>
    %170 = vector.extract_strided_slice %167 {offsets = [0, 64], sizes = [2, 32], strides = [1, 1]} : vector<2x128xf32> to vector<2x32xf32>
    %171 = vector.extract_strided_slice %167 {offsets = [0, 96], sizes = [2, 32], strides = [1, 1]} : vector<2x128xf32> to vector<2x32xf32>
    %172 = arith.mulf %169, %126 : vector<2x32xf32>
    %173 = arith.mulf %168, %171 : vector<2x32xf32>
    %174 = arith.addf %172, %173 : vector<2x32xf32>
    %175 = math.tanh %174 : vector<2x32xf32>
    %176 = arith.mulf %170, %175 : vector<2x32xf32>
    %177 = arith.truncf %176 : vector<2x32xf32> to vector<2x32xbf16>
    %178 = tpu.concatenate %177, %152 in 1 : vector<2x32xbf16>, vector<2x32xbf16> -> vector<2x64xbf16>
    %cst_24 = arith.constant dense<0.000000e+00> : vector<2x256xf32>
    %179 = tpu.matmul %178, %0, %cst_24 {dimension_numbers = #tpu.dot_dimension_numbers<[1], [0], [0], [1], [0, 0, 1, 1], [], []>} : vector<2x64xbf16>, vector<64x256xbf16>, vector<2x256xf32> -> vector<2x256xf32>
    %180 = vector.extract_strided_slice %179 {offsets = [0, 0], sizes = [2, 128], strides = [1, 1]} : vector<2x256xf32> to vector<2x128xf32>
    %181 = vector.extract_strided_slice %179 {offsets = [0, 128], sizes = [2, 128], strides = [1, 1]} : vector<2x256xf32> to vector<2x128xf32>
    %182 = vector.broadcast %1 : vector<1x128xf32> to vector<2x128xf32>
    %183 = arith.addf %181, %182 : vector<2x128xf32>
    %184 = arith.negf %183 : vector<2x128xf32>
    %185 = math.exp %184 : vector<2x128xf32>
    %cst_25 = arith.constant 1.000000e+00 : f32
    %186 = vector.broadcast %cst_25 : f32 to vector<2x128xf32>
    %187 = arith.addf %186, %185 : vector<2x128xf32>
    %188 = arith.divf %186, %187 : vector<2x128xf32>
    %189 = math.tanh %183 : vector<2x128xf32>
    %190 = arith.select %4, %188, %189 : vector<2x128xi1>, vector<2x128xf32>
    %191 = vector.extract_strided_slice %190 {offsets = [0, 0], sizes = [2, 32], strides = [1, 1]} : vector<2x128xf32> to vector<2x32xf32>
    %192 = vector.extract_strided_slice %190 {offsets = [0, 32], sizes = [2, 32], strides = [1, 1]} : vector<2x128xf32> to vector<2x32xf32>
    %193 = vector.extract_strided_slice %190 {offsets = [0, 64], sizes = [2, 32], strides = [1, 1]} : vector<2x128xf32> to vector<2x32xf32>
    %194 = vector.extract_strided_slice %190 {offsets = [0, 96], sizes = [2, 32], strides = [1, 1]} : vector<2x128xf32> to vector<2x32xf32>
    %195 = arith.mulf %192, %149 : vector<2x32xf32>
    %196 = arith.mulf %191, %194 : vector<2x32xf32>
    %197 = arith.addf %195, %196 : vector<2x32xf32>
    %198 = math.tanh %197 : vector<2x32xf32>
    %199 = arith.mulf %193, %198 : vector<2x32xf32>
    %200 = arith.truncf %199 : vector<2x32xf32> to vector<2x32xbf16>
    %c4 = arith.constant 4 : index
    %201 = memref.load %arg0[%c4] : memref<16xi32, #tpu.memory_space<smem>>
    %202 = arith.index_cast %201 : i32 to index
    %c0_26 = arith.constant 0 : index
    %203 = vector.load %arg1[%202, %c0_26] : memref<66x128xf32, #tpu.memory_space<vmem>>, vector<1x128xf32>
    %c12 = arith.constant 12 : index
    %204 = memref.load %arg0[%c12] : memref<16xi32, #tpu.memory_space<smem>>
    %205 = arith.index_cast %204 : i32 to index
    %c0_27 = arith.constant 0 : index
    %206 = vector.load %arg1[%205, %c0_27] : memref<66x128xf32, #tpu.memory_space<vmem>>, vector<1x128xf32>
    %207 = tpu.concatenate %203, %206 in 0 : vector<1x128xf32>, vector<1x128xf32> -> vector<2x128xf32>
    %208 = arith.addf %207, %180 : vector<2x128xf32>
    %209 = arith.negf %208 : vector<2x128xf32>
    %210 = math.exp %209 : vector<2x128xf32>
    %cst_28 = arith.constant 1.000000e+00 : f32
    %211 = vector.broadcast %cst_28 : f32 to vector<2x128xf32>
    %212 = arith.addf %211, %210 : vector<2x128xf32>
    %213 = arith.divf %211, %212 : vector<2x128xf32>
    %214 = math.tanh %208 : vector<2x128xf32>
    %215 = arith.select %4, %213, %214 : vector<2x128xi1>, vector<2x128xf32>
    %216 = vector.extract_strided_slice %215 {offsets = [0, 0], sizes = [2, 32], strides = [1, 1]} : vector<2x128xf32> to vector<2x32xf32>
    %217 = vector.extract_strided_slice %215 {offsets = [0, 32], sizes = [2, 32], strides = [1, 1]} : vector<2x128xf32> to vector<2x32xf32>
    %218 = vector.extract_strided_slice %215 {offsets = [0, 64], sizes = [2, 32], strides = [1, 1]} : vector<2x128xf32> to vector<2x32xf32>
    %219 = vector.extract_strided_slice %215 {offsets = [0, 96], sizes = [2, 32], strides = [1, 1]} : vector<2x128xf32> to vector<2x32xf32>
    %220 = arith.mulf %217, %174 : vector<2x32xf32>
    %221 = arith.mulf %216, %219 : vector<2x32xf32>
    %222 = arith.addf %220, %221 : vector<2x32xf32>
    %223 = math.tanh %222 : vector<2x32xf32>
    %224 = arith.mulf %218, %223 : vector<2x32xf32>
    %225 = arith.truncf %224 : vector<2x32xf32> to vector<2x32xbf16>
    %226 = tpu.concatenate %225, %200 in 1 : vector<2x32xbf16>, vector<2x32xbf16> -> vector<2x64xbf16>
    %cst_29 = arith.constant dense<0.000000e+00> : vector<2x256xf32>
    %227 = tpu.matmul %226, %0, %cst_29 {dimension_numbers = #tpu.dot_dimension_numbers<[1], [0], [0], [1], [0, 0, 1, 1], [], []>} : vector<2x64xbf16>, vector<64x256xbf16>, vector<2x256xf32> -> vector<2x256xf32>
    %228 = vector.extract_strided_slice %227 {offsets = [0, 0], sizes = [2, 128], strides = [1, 1]} : vector<2x256xf32> to vector<2x128xf32>
    %229 = vector.extract_strided_slice %227 {offsets = [0, 128], sizes = [2, 128], strides = [1, 1]} : vector<2x256xf32> to vector<2x128xf32>
    %230 = vector.broadcast %1 : vector<1x128xf32> to vector<2x128xf32>
    %231 = arith.addf %229, %230 : vector<2x128xf32>
    %232 = arith.negf %231 : vector<2x128xf32>
    %233 = math.exp %232 : vector<2x128xf32>
    %cst_30 = arith.constant 1.000000e+00 : f32
    %234 = vector.broadcast %cst_30 : f32 to vector<2x128xf32>
    %235 = arith.addf %234, %233 : vector<2x128xf32>
    %236 = arith.divf %234, %235 : vector<2x128xf32>
    %237 = math.tanh %231 : vector<2x128xf32>
    %238 = arith.select %4, %236, %237 : vector<2x128xi1>, vector<2x128xf32>
    %239 = vector.extract_strided_slice %238 {offsets = [0, 0], sizes = [2, 32], strides = [1, 1]} : vector<2x128xf32> to vector<2x32xf32>
    %240 = vector.extract_strided_slice %238 {offsets = [0, 32], sizes = [2, 32], strides = [1, 1]} : vector<2x128xf32> to vector<2x32xf32>
    %241 = vector.extract_strided_slice %238 {offsets = [0, 64], sizes = [2, 32], strides = [1, 1]} : vector<2x128xf32> to vector<2x32xf32>
    %242 = vector.extract_strided_slice %238 {offsets = [0, 96], sizes = [2, 32], strides = [1, 1]} : vector<2x128xf32> to vector<2x32xf32>
    %243 = arith.mulf %240, %197 : vector<2x32xf32>
    %244 = arith.mulf %239, %242 : vector<2x32xf32>
    %245 = arith.addf %243, %244 : vector<2x32xf32>
    %246 = math.tanh %245 : vector<2x32xf32>
    %247 = arith.mulf %241, %246 : vector<2x32xf32>
    %248 = arith.truncf %247 : vector<2x32xf32> to vector<2x32xbf16>
    %c5 = arith.constant 5 : index
    %249 = memref.load %arg0[%c5] : memref<16xi32, #tpu.memory_space<smem>>
    %250 = arith.index_cast %249 : i32 to index
    %c0_31 = arith.constant 0 : index
    %251 = vector.load %arg1[%250, %c0_31] : memref<66x128xf32, #tpu.memory_space<vmem>>, vector<1x128xf32>
    %c13 = arith.constant 13 : index
    %252 = memref.load %arg0[%c13] : memref<16xi32, #tpu.memory_space<smem>>
    %253 = arith.index_cast %252 : i32 to index
    %c0_32 = arith.constant 0 : index
    %254 = vector.load %arg1[%253, %c0_32] : memref<66x128xf32, #tpu.memory_space<vmem>>, vector<1x128xf32>
    %255 = tpu.concatenate %251, %254 in 0 : vector<1x128xf32>, vector<1x128xf32> -> vector<2x128xf32>
    %256 = arith.addf %255, %228 : vector<2x128xf32>
    %257 = arith.negf %256 : vector<2x128xf32>
    %258 = math.exp %257 : vector<2x128xf32>
    %cst_33 = arith.constant 1.000000e+00 : f32
    %259 = vector.broadcast %cst_33 : f32 to vector<2x128xf32>
    %260 = arith.addf %259, %258 : vector<2x128xf32>
    %261 = arith.divf %259, %260 : vector<2x128xf32>
    %262 = math.tanh %256 : vector<2x128xf32>
    %263 = arith.select %4, %261, %262 : vector<2x128xi1>, vector<2x128xf32>
    %264 = vector.extract_strided_slice %263 {offsets = [0, 0], sizes = [2, 32], strides = [1, 1]} : vector<2x128xf32> to vector<2x32xf32>
    %265 = vector.extract_strided_slice %263 {offsets = [0, 32], sizes = [2, 32], strides = [1, 1]} : vector<2x128xf32> to vector<2x32xf32>
    %266 = vector.extract_strided_slice %263 {offsets = [0, 64], sizes = [2, 32], strides = [1, 1]} : vector<2x128xf32> to vector<2x32xf32>
    %267 = vector.extract_strided_slice %263 {offsets = [0, 96], sizes = [2, 32], strides = [1, 1]} : vector<2x128xf32> to vector<2x32xf32>
    %268 = arith.mulf %265, %222 : vector<2x32xf32>
    %269 = arith.mulf %264, %267 : vector<2x32xf32>
    %270 = arith.addf %268, %269 : vector<2x32xf32>
    %271 = math.tanh %270 : vector<2x32xf32>
    %272 = arith.mulf %266, %271 : vector<2x32xf32>
    %273 = arith.truncf %272 : vector<2x32xf32> to vector<2x32xbf16>
    %274 = tpu.concatenate %273, %248 in 1 : vector<2x32xbf16>, vector<2x32xbf16> -> vector<2x64xbf16>
    %cst_34 = arith.constant dense<0.000000e+00> : vector<2x256xf32>
    %275 = tpu.matmul %274, %0, %cst_34 {dimension_numbers = #tpu.dot_dimension_numbers<[1], [0], [0], [1], [0, 0, 1, 1], [], []>} : vector<2x64xbf16>, vector<64x256xbf16>, vector<2x256xf32> -> vector<2x256xf32>
    %276 = vector.extract_strided_slice %275 {offsets = [0, 0], sizes = [2, 128], strides = [1, 1]} : vector<2x256xf32> to vector<2x128xf32>
    %277 = vector.extract_strided_slice %275 {offsets = [0, 128], sizes = [2, 128], strides = [1, 1]} : vector<2x256xf32> to vector<2x128xf32>
    %278 = vector.broadcast %1 : vector<1x128xf32> to vector<2x128xf32>
    %279 = arith.addf %277, %278 : vector<2x128xf32>
    %280 = arith.negf %279 : vector<2x128xf32>
    %281 = math.exp %280 : vector<2x128xf32>
    %cst_35 = arith.constant 1.000000e+00 : f32
    %282 = vector.broadcast %cst_35 : f32 to vector<2x128xf32>
    %283 = arith.addf %282, %281 : vector<2x128xf32>
    %284 = arith.divf %282, %283 : vector<2x128xf32>
    %285 = math.tanh %279 : vector<2x128xf32>
    %286 = arith.select %4, %284, %285 : vector<2x128xi1>, vector<2x128xf32>
    %287 = vector.extract_strided_slice %286 {offsets = [0, 0], sizes = [2, 32], strides = [1, 1]} : vector<2x128xf32> to vector<2x32xf32>
    %288 = vector.extract_strided_slice %286 {offsets = [0, 32], sizes = [2, 32], strides = [1, 1]} : vector<2x128xf32> to vector<2x32xf32>
    %289 = vector.extract_strided_slice %286 {offsets = [0, 64], sizes = [2, 32], strides = [1, 1]} : vector<2x128xf32> to vector<2x32xf32>
    %290 = vector.extract_strided_slice %286 {offsets = [0, 96], sizes = [2, 32], strides = [1, 1]} : vector<2x128xf32> to vector<2x32xf32>
    %291 = arith.mulf %288, %245 : vector<2x32xf32>
    %292 = arith.mulf %287, %290 : vector<2x32xf32>
    %293 = arith.addf %291, %292 : vector<2x32xf32>
    %294 = math.tanh %293 : vector<2x32xf32>
    %295 = arith.mulf %289, %294 : vector<2x32xf32>
    %296 = arith.truncf %295 : vector<2x32xf32> to vector<2x32xbf16>
    %c6 = arith.constant 6 : index
    %297 = memref.load %arg0[%c6] : memref<16xi32, #tpu.memory_space<smem>>
    %298 = arith.index_cast %297 : i32 to index
    %c0_36 = arith.constant 0 : index
    %299 = vector.load %arg1[%298, %c0_36] : memref<66x128xf32, #tpu.memory_space<vmem>>, vector<1x128xf32>
    %c14 = arith.constant 14 : index
    %300 = memref.load %arg0[%c14] : memref<16xi32, #tpu.memory_space<smem>>
    %301 = arith.index_cast %300 : i32 to index
    %c0_37 = arith.constant 0 : index
    %302 = vector.load %arg1[%301, %c0_37] : memref<66x128xf32, #tpu.memory_space<vmem>>, vector<1x128xf32>
    %303 = tpu.concatenate %299, %302 in 0 : vector<1x128xf32>, vector<1x128xf32> -> vector<2x128xf32>
    %304 = arith.addf %303, %276 : vector<2x128xf32>
    %305 = arith.negf %304 : vector<2x128xf32>
    %306 = math.exp %305 : vector<2x128xf32>
    %cst_38 = arith.constant 1.000000e+00 : f32
    %307 = vector.broadcast %cst_38 : f32 to vector<2x128xf32>
    %308 = arith.addf %307, %306 : vector<2x128xf32>
    %309 = arith.divf %307, %308 : vector<2x128xf32>
    %310 = math.tanh %304 : vector<2x128xf32>
    %311 = arith.select %4, %309, %310 : vector<2x128xi1>, vector<2x128xf32>
    %312 = vector.extract_strided_slice %311 {offsets = [0, 0], sizes = [2, 32], strides = [1, 1]} : vector<2x128xf32> to vector<2x32xf32>
    %313 = vector.extract_strided_slice %311 {offsets = [0, 32], sizes = [2, 32], strides = [1, 1]} : vector<2x128xf32> to vector<2x32xf32>
    %314 = vector.extract_strided_slice %311 {offsets = [0, 64], sizes = [2, 32], strides = [1, 1]} : vector<2x128xf32> to vector<2x32xf32>
    %315 = vector.extract_strided_slice %311 {offsets = [0, 96], sizes = [2, 32], strides = [1, 1]} : vector<2x128xf32> to vector<2x32xf32>
    %316 = arith.mulf %313, %270 : vector<2x32xf32>
    %317 = arith.mulf %312, %315 : vector<2x32xf32>
    %318 = arith.addf %316, %317 : vector<2x32xf32>
    %319 = math.tanh %318 : vector<2x32xf32>
    %320 = arith.mulf %314, %319 : vector<2x32xf32>
    %321 = arith.truncf %320 : vector<2x32xf32> to vector<2x32xbf16>
    %322 = tpu.concatenate %321, %296 in 1 : vector<2x32xbf16>, vector<2x32xbf16> -> vector<2x64xbf16>
    %cst_39 = arith.constant dense<0.000000e+00> : vector<2x256xf32>
    %323 = tpu.matmul %322, %0, %cst_39 {dimension_numbers = #tpu.dot_dimension_numbers<[1], [0], [0], [1], [0, 0, 1, 1], [], []>} : vector<2x64xbf16>, vector<64x256xbf16>, vector<2x256xf32> -> vector<2x256xf32>
    %324 = vector.extract_strided_slice %323 {offsets = [0, 0], sizes = [2, 128], strides = [1, 1]} : vector<2x256xf32> to vector<2x128xf32>
    %325 = vector.extract_strided_slice %323 {offsets = [0, 128], sizes = [2, 128], strides = [1, 1]} : vector<2x256xf32> to vector<2x128xf32>
    %326 = vector.broadcast %1 : vector<1x128xf32> to vector<2x128xf32>
    %327 = arith.addf %325, %326 : vector<2x128xf32>
    %328 = arith.negf %327 : vector<2x128xf32>
    %329 = math.exp %328 : vector<2x128xf32>
    %cst_40 = arith.constant 1.000000e+00 : f32
    %330 = vector.broadcast %cst_40 : f32 to vector<2x128xf32>
    %331 = arith.addf %330, %329 : vector<2x128xf32>
    %332 = arith.divf %330, %331 : vector<2x128xf32>
    %333 = math.tanh %327 : vector<2x128xf32>
    %334 = arith.select %4, %332, %333 : vector<2x128xi1>, vector<2x128xf32>
    %335 = vector.extract_strided_slice %334 {offsets = [0, 0], sizes = [2, 32], strides = [1, 1]} : vector<2x128xf32> to vector<2x32xf32>
    %336 = vector.extract_strided_slice %334 {offsets = [0, 32], sizes = [2, 32], strides = [1, 1]} : vector<2x128xf32> to vector<2x32xf32>
    %337 = vector.extract_strided_slice %334 {offsets = [0, 64], sizes = [2, 32], strides = [1, 1]} : vector<2x128xf32> to vector<2x32xf32>
    %338 = vector.extract_strided_slice %334 {offsets = [0, 96], sizes = [2, 32], strides = [1, 1]} : vector<2x128xf32> to vector<2x32xf32>
    %339 = arith.mulf %336, %293 : vector<2x32xf32>
    %340 = arith.mulf %335, %338 : vector<2x32xf32>
    %341 = arith.addf %339, %340 : vector<2x32xf32>
    %342 = math.tanh %341 : vector<2x32xf32>
    %343 = arith.mulf %337, %342 : vector<2x32xf32>
    %344 = arith.truncf %343 : vector<2x32xf32> to vector<2x32xbf16>
    %c7 = arith.constant 7 : index
    %345 = memref.load %arg0[%c7] : memref<16xi32, #tpu.memory_space<smem>>
    %346 = arith.index_cast %345 : i32 to index
    %c0_41 = arith.constant 0 : index
    %347 = vector.load %arg1[%346, %c0_41] : memref<66x128xf32, #tpu.memory_space<vmem>>, vector<1x128xf32>
    %c15 = arith.constant 15 : index
    %348 = memref.load %arg0[%c15] : memref<16xi32, #tpu.memory_space<smem>>
    %349 = arith.index_cast %348 : i32 to index
    %c0_42 = arith.constant 0 : index
    %350 = vector.load %arg1[%349, %c0_42] : memref<66x128xf32, #tpu.memory_space<vmem>>, vector<1x128xf32>
    %351 = tpu.concatenate %347, %350 in 0 : vector<1x128xf32>, vector<1x128xf32> -> vector<2x128xf32>
    %352 = arith.addf %351, %324 : vector<2x128xf32>
    %353 = arith.negf %352 : vector<2x128xf32>
    %354 = math.exp %353 : vector<2x128xf32>
    %cst_43 = arith.constant 1.000000e+00 : f32
    %355 = vector.broadcast %cst_43 : f32 to vector<2x128xf32>
    %356 = arith.addf %355, %354 : vector<2x128xf32>
    %357 = arith.divf %355, %356 : vector<2x128xf32>
    %358 = math.tanh %352 : vector<2x128xf32>
    %359 = arith.select %4, %357, %358 : vector<2x128xi1>, vector<2x128xf32>
    %360 = vector.extract_strided_slice %359 {offsets = [0, 0], sizes = [2, 32], strides = [1, 1]} : vector<2x128xf32> to vector<2x32xf32>
    %361 = vector.extract_strided_slice %359 {offsets = [0, 32], sizes = [2, 32], strides = [1, 1]} : vector<2x128xf32> to vector<2x32xf32>
    %362 = vector.extract_strided_slice %359 {offsets = [0, 64], sizes = [2, 32], strides = [1, 1]} : vector<2x128xf32> to vector<2x32xf32>
    %363 = vector.extract_strided_slice %359 {offsets = [0, 96], sizes = [2, 32], strides = [1, 1]} : vector<2x128xf32> to vector<2x32xf32>
    %364 = arith.mulf %361, %318 : vector<2x32xf32>
    %365 = arith.mulf %360, %363 : vector<2x32xf32>
    %366 = arith.addf %364, %365 : vector<2x32xf32>
    %367 = math.tanh %366 : vector<2x32xf32>
    %368 = arith.mulf %362, %367 : vector<2x32xf32>
    %369 = arith.truncf %368 : vector<2x32xf32> to vector<2x32xbf16>
    %370 = tpu.concatenate %369, %344 in 1 : vector<2x32xbf16>, vector<2x32xbf16> -> vector<2x64xbf16>
    %cst_44 = arith.constant dense<0.000000e+00> : vector<2x256xf32>
    %371 = tpu.matmul %370, %0, %cst_44 {dimension_numbers = #tpu.dot_dimension_numbers<[1], [0], [0], [1], [0, 0, 1, 1], [], []>} : vector<2x64xbf16>, vector<64x256xbf16>, vector<2x256xf32> -> vector<2x256xf32>
    %372 = vector.extract_strided_slice %371 {offsets = [0, 128], sizes = [2, 128], strides = [1, 1]} : vector<2x256xf32> to vector<2x128xf32>
    %373 = vector.broadcast %1 : vector<1x128xf32> to vector<2x128xf32>
    %374 = arith.addf %372, %373 : vector<2x128xf32>
    %375 = arith.negf %374 : vector<2x128xf32>
    %376 = math.exp %375 : vector<2x128xf32>
    %cst_45 = arith.constant 1.000000e+00 : f32
    %377 = vector.broadcast %cst_45 : f32 to vector<2x128xf32>
    %378 = arith.addf %377, %376 : vector<2x128xf32>
    %379 = arith.divf %377, %378 : vector<2x128xf32>
    %380 = math.tanh %374 : vector<2x128xf32>
    %381 = arith.select %4, %379, %380 : vector<2x128xi1>, vector<2x128xf32>
    %382 = vector.extract_strided_slice %381 {offsets = [0, 0], sizes = [2, 32], strides = [1, 1]} : vector<2x128xf32> to vector<2x32xf32>
    %383 = vector.extract_strided_slice %381 {offsets = [0, 32], sizes = [2, 32], strides = [1, 1]} : vector<2x128xf32> to vector<2x32xf32>
    %384 = vector.extract_strided_slice %381 {offsets = [0, 64], sizes = [2, 32], strides = [1, 1]} : vector<2x128xf32> to vector<2x32xf32>
    %385 = vector.extract_strided_slice %381 {offsets = [0, 96], sizes = [2, 32], strides = [1, 1]} : vector<2x128xf32> to vector<2x32xf32>
    %386 = arith.mulf %383, %341 : vector<2x32xf32>
    %387 = arith.mulf %382, %385 : vector<2x32xf32>
    %388 = arith.addf %386, %387 : vector<2x32xf32>
    %389 = math.tanh %388 : vector<2x32xf32>
    %390 = arith.mulf %384, %389 : vector<2x32xf32>
    %c0_46 = arith.constant 0 : index
    %c0_47 = arith.constant 0 : index
    %391 = vector.load %arg3[%c0_46, %c0_47] : memref<2x32xf32, #tpu.memory_space<vmem>>, vector<2x32xf32>
    tpu.vector_store %arg3[%c0_46, %c0_47], %390 {strides = array<i32>} : memref<2x32xf32, #tpu.memory_space<vmem>>, vector<2x32xf32>,
    return
  }
}

</mosaic_0001>

<bundles_post_ra>
// kernel: tpu_custom_call.1
= control target key start
LH: loop header
LB: loop body
LE: loop exit
PB: predicated region body
PF: predicated region fallthrough
CT: control target
= control target key end

     0   :  { %8 = vsyncpa [#allocation5], 0  ;;  %s1657_s0 = inlined_call_operand.hbm [shape: s32[16], index: 0, kind: input, shape index: {}]   ;;  %s1658_s1 = inlined_call_operand.hbm [shape: f32[66,128], index: 1, kind: input, shape index: {}]   ;;  %s1659_s2 = inlined_call_operand.hbm [shape: bf16[64,256], index: 2, kind: input, shape index: {}]   ;;  %s1660_s3 = inlined_call_operand.hbm [shape: f32[2,32], index: 3, kind: output, shape index: {}]  }
   0x1   :  { %9 = vsyncpa [#allocation3], 0 }
   0x2   :  { %10 = vsyncpa [#allocation8], 0 }
   0x3   :  { %11 = vsyncpa [#allocation4], 0  ;;  %s1350_s12 = smov [#allocation2]   ;;  %s1351_s15 = smov [#allocation6]  }
   0x4   :  { %19 = dma.hbm_to_smem %s1657_s0, 16, %s1350_s12, [#allocation5]  }
   0x5   :  { %s25_s16 = sshll.u32 %s1351_s15, 4  ;;  %s26_s16 = int_to_ptr.vmem [resolvable:$true] %s25_s16 }
   0x6   :  { %s1290_s17 = scalar_lea.vmem %s26_s16, 1152  ;;  %p1295_p1 = scmp.lt.s32.totalorder %s26_s16, %s26_s16 }
   0x7   :  { %p1291_p0 = scmp.ne.s32.totalorder %s26_s16, %s1290_s17  ;;  %p1296_p2 = scmp.lt.s32.totalorder %s1290_s17, %s1290_s17 }
   0x9   :  { %p1297_p3 = por %p1296_p2, %p1295_p1 }
   0xb   :  { %p1298_p4 = pnand %p1297_p3, %p1291_p0 }
   0xd   :  { %1301 = shalt.err (!%p1298_p4)
}
   0xe   :  { %s1352_s18 = smov 128   ;;  %s1353_s19 = smov 8  }
   0xf   :  { %31 = dma.hbm_to_vmem [thread:$0]  %s1658_s1, 1152, %s26_s16, [#allocation3], %s1352_s18, %s1352_s18, %s1353_s19  }
  0x10   :  { %s1354_s22 = smov [#allocation7]  }
  0x11   :  { %s37_s23 = sshll.u32 %s1354_s22, 4  ;;  %s38_s23 = int_to_ptr.vmem [resolvable:$true] %s37_s23 }
  0x12   :  { %s1310_s0 = scalar_lea.vmem %s38_s23, 1024  ;;  %p1315_p6 = scmp.lt.s32.totalorder %s38_s23, %s38_s23 }
  0x13   :  { %p1311_p5 = scmp.ne.s32.totalorder %s38_s23, %s1310_s0  ;;  %p1316_p7 = scmp.lt.s32.totalorder %s1310_s0, %s1310_s0 }
  0x15   :  { %p1317_p8 = por %p1316_p7, %p1315_p6 }
  0x17   :  { %p1318_p9 = pnand %p1317_p8, %p1311_p5 }
  0x19   :  { %1321 = shalt.err (!%p1318_p9)
}
  0x1a   :  { %43 = dma.hbm_to_vmem [thread:$0]  %s1659_s2, 1024, %s38_s23, [#allocation8], %s1352_s18, %s1352_s18, %s1353_s19  }
  0x1b   :  { %1342 = dma.done.wait [#allocation5], 16  }
  0x1c   :  { %1343 = vsyncadd [#allocation5], 4294967280 }
  0x1d   :  { %1344 = dma.done.wait [#allocation3], 1152  }
  0x1e   :  { %1345 = vsyncadd [#allocation3], 4294966144 }
  0x1f   :  { %1346 = dma.done.wait [#allocation8], 1024  }
  0x20   :  { %1347 = vsyncadd [#allocation8], 4294966272 }
  0x21   :  { %53 = sfence }
  0x22   :  { %s67_s1 = sld [smem:[#allocation2]]  ;;  %vm76_vm0 = vcmask 1040384   ;;  %v64_v7 = vlaneseq  ;;  %s1355_s2 = smov 32   ;;  %v1400_v17 = vld [vmem:[#allocation7 + $0x34] ss:$8 sps:$4 sm:$0xff]   ;;  %v1356_v26 = vmov 0  }
  0x23   :  { %s1076_s26 = sld [smem:[#allocation2 + $0x8]]  ;;  %v1402_v18 = vld [vmem:[#allocation7 + $0x30] ss:$8 sps:$4 sm:$0xff]   ;;  %v1404_v19 = vld [vmem:[#allocation7 + $0x24] ss:$8 sps:$4 sm:$0xff]   ;;  %163 = vmatprep.subr.bf16.mxu0 %v1400_v17  ;;  %283 = vmatprep.subr.bf16.mxu1 %v1400_v17  ;;  %s1357_s29 = smov 64  }
  0x24   :  { %v1390_v8 = vand.u32 127, %v64_v7  ;;  %164 = vmatpush1.bf16.msra.mxu0 %v1402_v18  ;;  %v1409_v20 = vld [vmem:[#allocation7 + $0x20] ss:$8 sps:$4 sm:$0xff]   ;;  %284 = vmatpush1.bf16.msra.mxu1 %v1402_v18  ;;  %v1413_v21 = vld [vmem:[#allocation7 + $0x14] ss:$8 sps:$4 sm:$0xff]   ;;  %vm108_vm2 = vcmask 261120  }
  0x25   :  { %165 = vmatprep.subr.bf16.mxu0 %v1404_v19  ;;  %285 = vmatprep.subr.bf16.mxu1 %v1404_v19  ;;  %v1417_v22 = vld [vmem:[#allocation7 + $0x10] ss:$8 sps:$4 sm:$0xff]   ;;  %v1421_v24 = vld [vmem:[#allocation7 + $0x4] ss:$8 sps:$4 sm:$0xff]   ;;  %v1426_v25 = vld [vmem:[#allocation7] ss:$8 sps:$4 sm:$0xff]  }
  0x26   :  { %vm66_vm1 = vcmp.lt.s32.totalorder %v1390_v8, 96  ;;  %187 = vmatprep.mubr.bf16.mxu0 %v1356_v26  ;;  %307 = vmatprep.mubr.bf16.mxu1 %v1356_v26  ;;  %vm152_vm3 = vcmask 523264   ;;  %s1090_s30 = sld [smem:[#allocation2 + $0x9]]  ;;  %v1450_v37 = vld [vmem:[#allocation6 + $0x41] ss:$0 sm:$0xff]  ;;  %s1358_s7 = smov 96  }
  0x27   :  { %s1089_s4 = sld [smem:[#allocation2 + $0x1]]  ;;  %vm1041_vm4 = vcmask 254976  }
  0x28   :  { %s68_s27 = scalar_lea.vmem [#allocation6], %s67_s1  ;;  %166 = vmatpush1.bf16.msra.mxu0 %v1409_v20  ;;  %286 = vmatpush1.bf16.msra.mxu1 %v1409_v20  ;;  %s1095_s8 = sld [smem:[#allocation2 + $0xa]] }
  0x29   :  { %v69_v0 = vld [vmem:[%s68_s27] sm:$0x1]  ;;  %s71_s28 = scalar_lea.vmem [#allocation6], %s1076_s26  ;;  %167 = vmatprep.subr.bf16.mxu0 %v1413_v21  ;;  %287 = vmatprep.subr.bf16.mxu1 %v1413_v21  ;;  %s1094_s9 = sld [smem:[#allocation2 + $0x2]] }
  0x2a   :  { %v72_v1 = vld [vmem:[%s71_s28] sm:$0x1]  ;;  %s1100_s12 = sld [smem:[#allocation2 + $0xb]] }
  0x2b   :  { %v74_v2 = vrot.slane %v72_v1, 7  ;;  %s1099_s13 = sld [smem:[#allocation2 + $0x3]] }
  0x2c   :  { %168 = vmatpush1.bf16.msra.mxu0 %v1417_v22  ;;  %288 = vmatpush1.bf16.msra.mxu1 %v1417_v22  ;;  %s231_s5 = scalar_lea.vmem [#allocation6], %s1090_s30  ;;  %s1105_s16 = sld [smem:[#allocation2 + $0xc]] }
  0x2d   :  { %v77_v3 = vsel %vm76_vm0, %v69_v0, %v74_v2  ;;  %169 = vmatprep.subr.bf16.mxu0 %v1421_v24  ;;  %289 = vmatprep.subr.bf16.mxu1 %v1421_v24  ;;  %v232_v32 = vld [vmem:[%s231_s5] sm:$0x1]  ;;  %s228_s6 = scalar_lea.vmem [#allocation6], %s1089_s4  ;;  %s1104_s17 = sld [smem:[#allocation2 + $0x4]] }
  0x2e   :  { %v1077_v4 = vmul.f32 -1.442695, %v77_v3  ;;  %v234_v33 = vrot.slane %v232_v32, 7  ;;  %v229_v34 = vld [vmem:[%s228_s6] sm:$0x1]  ;;  %s347_s10 = scalar_lea.vmem [#allocation6], %s1095_s8 }
  0x2f   :  { %s344_s11 = scalar_lea.vmem [#allocation6], %s1094_s9  ;;  %s1110_s20 = sld [smem:[#allocation2 + $0xd]] }
  0x30   :  { %1146 = vpow2.f32 %v1077_v4  ;;  %170 = vmatpush1.bf16.msra.mxu0 %v1426_v25  ;;  %290 = vmatpush1.bf16.msra.mxu1 %v1426_v25  ;;  %v236_v35 = vsel %vm76_vm0, %v229_v34, %v234_v33  ;;  %s463_s14 = scalar_lea.vmem [#allocation6], %s1100_s12  ;;  %s1109_s21 = sld [smem:[#allocation2 + $0x5]] }
  0x31   :  { %1148 = vtanh.f32 %v77_v3  ;;  %399 = vmatprep.subr.bf16.mxu0 %v1400_v17  ;;  %515 = vmatprep.subr.bf16.mxu1 %v1400_v17  ;;  %s460_s15 = scalar_lea.vmem [#allocation6], %s1099_s13  ;;  %s1115_s0 = sld [smem:[#allocation2 + $0xe]] }
  0x32   :  { %s579_s18 = scalar_lea.vmem [#allocation6], %s1105_s16  ;;  %s1114_s24 = sld [smem:[#allocation2 + $0x6]] }
  0x33   :  { %s576_s19 = scalar_lea.vmem [#allocation6], %s1104_s17  ;;  %s1120_s26 = sld [smem:[#allocation2 + $0xf]] }
  0x34   :  { %s1119_s27 = sld [smem:[#allocation2 + $0x7]]  ;;  %s1359_s4 = smov [#allocation9]  }
  0x35   :  { %s695_s22 = scalar_lea.vmem [#allocation6], %s1110_s20  ;;  %s1049_s5 = sshll.u32 %s1359_s4, 4  ;;  %s1050_s5 = int_to_ptr.vmem [resolvable:$true] %s1049_s5 }
  0x36   :  { %s692_s23 = scalar_lea.vmem [#allocation6], %s1109_s21  ;;  %s1322_s6 = scalar_lea.vmem %s1050_s5, 32 }
  0x37   :  { %s811_s25 = scalar_lea.vmem [#allocation6], %s1115_s0  ;;  %p1323_p10 = scmp.ne.s32.totalorder %s1050_s5, %s1322_s6 }
  0x38   :  { %s808_s1 = scalar_lea.vmem [#allocation6], %s1114_s24  ;;  %p1327_p11 = scmp.lt.s32.totalorder %s1050_s5, %s1050_s5 }
  0x39   :  { %s927_s28 = scalar_lea.vmem [#allocation6], %s1120_s26  ;;  %p1328_p12 = scmp.lt.s32.totalorder %s1322_s6, %s1322_s6 }
  0x3a   :  { %s924_s30 = scalar_lea.vmem [#allocation6], %s1119_s27 }
  0x3b   :  { %p1329_p13 = por %p1328_p12, %p1327_p11 }
  0x3d   :  { %v1147_v5 = vpop.eup %1146  ;;  %p1330_p0 = pnand %p1329_p13, %p1323_p10 }
  0x3e   :  { %v82_v6 = vadd.f32 1.0, %v1147_v5  ;;  %v1149_v9 = vpop.eup %1148 }
  0x40   :  { %1150 = vrcp.f32 %v82_v6 }
  0x4d   :  { %v1151_v10 = vpop.eup %1150 }
  0x4e   :  { %v86_v11 = vsel %vm66_vm1, %v1151_v10, %v1149_v9 }
  0x4f   :  { %89 = vrot.lane.b32.xlu0 %v86_v11, %s1355_s2  ;;  %v87_v14 = vmul.f32 0.0, %v86_v11 }
  0xc1   :  { %v90_v12 = vpop.permute.xlu0 %89 }
  0xc2   :  { %v92_v13 = vmul.f32 %v90_v12, %v86_v11 }
  0xc4   :  { %94 = vrot.lane.b32.xlu0 %v92_v13, %s1355_s2  ;;  %v348_v13 = vld [vmem:[%s347_s10] sm:$0x1] }
 0x136   :  { %v95_v15 = vpop.permute.xlu0 %94 }
 0x137   :  { %v1397_v16 = vadd.f32 %v95_v15, %v87_v14  ;;  %v350_v14 = vrot.slane %v348_v13, 7  ;;  %v345_v15 = vld [vmem:[%s344_s11] sm:$0x1] }
 0x139   :  { %1152 = vtanh.f32 %v1397_v16 }
 0x146   :  { %v1153_v23 = vpop.eup %1152 }
 0x147   :  { %100 = vrot.lane.b32.xlu1 %v1153_v23, %s1355_s2 }
 0x1b9   :  { %v101_v27 = vpop.permute.xlu1 %100 }
 0x1ba   :  { %v103_v28 = vmul.f32 %v101_v27, %v86_v11 }
 0x1bc   :  { %v104_v29 = vpack.c.bf16 %v103_v28, %v103_v28 }
 0x1be   :  { %106 = vrot.lane.b32.xlu1 %v104_v29, %s1357_s29 }
 0x230   :  { %v107_v30 = vpop.permute.xlu1 %106 }
 0x231   :  { %v111_v31 = vsel %vm108_vm2, %v107_v30, 0 }
 0x232   :  { %1086 = vmatmul.mubr.msk.bf16.vlgmr.msra.gmra.mxu0 %vm152_vm3, %v111_v31 }
 0x233   :  { %400 = vmatpush1.bf16.msra.mxu0 %v1402_v18  ;;  %423 = vmatprep.mubr.bf16.mxu0 %v1356_v26 }
 0x234   :  { %401 = vmatprep.subr.bf16.mxu0 %v1404_v19 }
 0x237   :  { %402 = vmatpush1.bf16.msra.mxu0 %v1409_v20 }
 0x238   :  { %403 = vmatprep.subr.bf16.mxu0 %v1413_v21 }
 0x23b   :  { %404 = vmatpush1.bf16.msra.mxu0 %v1417_v22 }
 0x23c   :  { %405 = vmatprep.subr.bf16.mxu0 %v1421_v24 }
 0x23f   :  { %406 = vmatpush1.bf16.msra.mxu0 %v1426_v25 }
 0x240   :  { %631 = vmatprep.subr.bf16.mxu0 %v1400_v17 }
 0x2f2   :  { %v189_v36 = vpop.f32.mrf.mxu0 }
 0x2f3   :  { %v237_v38 = vadd.f32 %v236_v35, %v189_v36 }
 0x2f4   :  { %v191_v39 = vpop.f32.mrf.mxu0 }
 0x2f5   :  { %v1091_v40 = vmul.f32 -1.442695, %v237_v38  ;;  %v200_v41 = vadd.f32 %v1450_v37, %v191_v39 }
 0x2f6   :  { %v193_v42 = vpop.f32.mrf.mxu0 }
 0x2f7   :  { %1154 = vpow2.f32 %v1091_v40  ;;  %v1088_v43 = vmul.f32 -1.442695, %v200_v41 }
 0x2f8   :  { %v194_v44 = vpop.f32.mrf.mxu0 }
 0x2f9   :  { %1156 = vpow2.f32 %v1088_v43 }
 0x2fa   :  { %1158 = vtanh.f32 %v237_v38 }
 0x304   :  { %v1155_v45 = vpop.eup %1154 }
 0x305   :  { %v241_v46 = vadd.f32 1.0, %v1155_v45 }
 0x306   :  { %v1157_v47 = vpop.eup %1156 }
 0x307   :  { %1160 = vrcp.f32 %v241_v46  ;;  %v204_v48 = vadd.f32 1.0, %v1157_v47  ;;  %v1159_v49 = vpop.eup %1158 }
 0x308   :  { %1162 = vtanh.f32 %v200_v41 }
 0x309   :  { %1164 = vrcp.f32 %v204_v48 }
 0x314   :  { %v1161_v50 = vpop.eup %1160 }
 0x315   :  { %v1163_v51 = vpop.eup %1162  ;;  %v245_v52 = vsel %vm66_vm1, %v1161_v50, %v1159_v49 }
 0x316   :  { %v1165_v53 = vpop.eup %1164  ;;  %248 = vrot.lane.b32.xlu1 %v245_v52, %s1355_s2  ;;  %v246_v59 = vmul.f32 %v245_v52, %v1397_v16  ;;  %v352_v16 = vsel %vm76_vm0, %v345_v15, %v350_v14 }
 0x317   :  { %v208_v54 = vsel %vm66_vm1, %v1165_v53, %v1163_v51 }
 0x318   :  { %211 = vrot.lane.b32.xlu0 %v208_v54, %s1355_s2  ;;  %v209_v62 = vmul.f32 0.0, %v208_v54 }
 0x388   :  { %v249_v55 = vpop.permute.xlu1 %248 }
 0x389   :  { %v251_v56 = vmul.f32 %v249_v55, %v245_v52 }
 0x38a   :  { %v212_v57 = vpop.permute.xlu0 %211 }
 0x38b   :  { %v214_v58 = vmul.f32 %v212_v57, %v208_v54  ;;  %253 = vrot.lane.b32.xlu1 %v251_v56, %s1355_s2 }
 0x38d   :  { %216 = vrot.lane.b32.xlu0 %v214_v58, %s1355_s2 }
 0x3fd   :  { %v254_v60 = vpop.permute.xlu1 %253 }
 0x3fe   :  { %v1462_v61 = vadd.f32 %v254_v60, %v246_v59 }
 0x3ff   :  { %v217_v63 = vpop.permute.xlu0 %216 }
 0x400   :  { %1166 = vtanh.f32 %v1462_v61  ;;  %v1465_v0 = vadd.f32 %v217_v63, %v209_v62 }
 0x402   :  { %1168 = vtanh.f32 %v1465_v0 }
 0x40d   :  { %v1167_v1 = vpop.eup %1166 }
 0x40e   :  { %259 = vrot.lane.b32.xlu1 %v1167_v1, %s1355_s2 }
 0x40f   :  { %v1169_v2 = vpop.eup %1168 }
 0x410   :  { %222 = vrot.lane.b32.xlu0 %v1169_v2, %s1355_s2  ;;  %v464_v2 = vld [vmem:[%s463_s14] sm:$0x1] }
 0x480   :  { %v260_v3 = vpop.permute.xlu1 %259 }
 0x481   :  { %v262_v4 = vmul.f32 %v260_v3, %v245_v52  ;;  %v466_v3 = vrot.slane %v464_v2, 7 }
 0x482   :  { %v223_v5 = vpop.permute.xlu0 %222 }
 0x483   :  { %v263_v6 = vpack.c.bf16 %v262_v4, %v262_v4  ;;  %v225_v7 = vmul.f32 %v223_v5, %v208_v54  ;;  %v461_v4 = vld [vmem:[%s460_s15] sm:$0x1] }
 0x484   :  { %v468_v5 = vsel %vm76_vm0, %v461_v4, %v466_v3 }
 0x485   :  { %v226_v9 = vpack.c.bf16 %v225_v7, %v225_v7  ;;  %265 = vrot.lane.b32.xlu0 %v263_v6, %s1357_s29 }
 0x487   :  { %268 = vrot.lane.b32.xlu1 %v226_v9, %s1358_s7 }
 0x4f7   :  { %v266_v10 = vpop.permute.xlu0 %265 }
 0x4f9   :  { %v269_v11 = vpop.permute.xlu1 %268 }
 0x4fa   :  { %v272_v12 = vsel %vm108_vm2, %v266_v10, %v269_v11 }
 0x4fb   :  { %1092 = vmatmul.mubr.msk.bf16.vlgmr.msra.gmra.mxu1 %vm152_vm3, %v272_v12 }
 0x4fc   :  { %516 = vmatpush1.bf16.msra.mxu1 %v1402_v18  ;;  %539 = vmatprep.mubr.bf16.mxu1 %v1356_v26 }
 0x4fd   :  { %517 = vmatprep.subr.bf16.mxu1 %v1404_v19 }
 0x500   :  { %518 = vmatpush1.bf16.msra.mxu1 %v1409_v20 }
 0x501   :  { %519 = vmatprep.subr.bf16.mxu1 %v1413_v21 }
 0x504   :  { %520 = vmatpush1.bf16.msra.mxu1 %v1417_v22 }
 0x505   :  { %521 = vmatprep.subr.bf16.mxu1 %v1421_v24 }
 0x508   :  { %522 = vmatpush1.bf16.msra.mxu1 %v1426_v25 }
 0x509   :  { %747 = vmatprep.subr.bf16.mxu1 %v1400_v17 }
 0x5bb   :  { %v309_v23 = vpop.f32.mrf.mxu1 }
 0x5bc   :  { %v353_v27 = vadd.f32 %v352_v16, %v309_v23 }
 0x5bd   :  { %v311_v28 = vpop.f32.mrf.mxu1 }
 0x5be   :  { %v1096_v29 = vmul.f32 -1.442695, %v353_v27  ;;  %v316_v30 = vadd.f32 %v1450_v37, %v311_v28 }
 0x5bf   :  { %v313_v31 = vpop.f32.mrf.mxu1 }
 0x5c0   :  { %1170 = vpow2.f32 %v1096_v29  ;;  %v1093_v32 = vmul.f32 -1.442695, %v316_v30 }
 0x5c1   :  { %v314_v33 = vpop.f32.mrf.mxu1 }
 0x5c2   :  { %1172 = vpow2.f32 %v1093_v32 }
 0x5c3   :  { %1174 = vtanh.f32 %v353_v27 }
 0x5cd   :  { %v1171_v34 = vpop.eup %1170 }
 0x5ce   :  { %v357_v35 = vadd.f32 1.0, %v1171_v34 }
 0x5cf   :  { %v1173_v36 = vpop.eup %1172 }
 0x5d0   :  { %1176 = vrcp.f32 %v357_v35  ;;  %v320_v38 = vadd.f32 1.0, %v1173_v36  ;;  %v1175_v39 = vpop.eup %1174 }
 0x5d1   :  { %1178 = vtanh.f32 %v316_v30 }
 0x5d2   :  { %1180 = vrcp.f32 %v320_v38 }
 0x5dd   :  { %v1177_v40 = vpop.eup %1176 }
 0x5de   :  { %v1179_v41 = vpop.eup %1178  ;;  %v361_v42 = vsel %vm66_vm1, %v1177_v40, %v1175_v39 }
 0x5df   :  { %v1181_v43 = vpop.eup %1180  ;;  %364 = vrot.lane.b32.xlu1 %v361_v42, %s1355_s2  ;;  %v362_v49 = vmul.f32 %v361_v42, %v1462_v61 }
 0x5e0   :  { %v324_v44 = vsel %vm66_vm1, %v1181_v43, %v1179_v41 }
 0x5e1   :  { %327 = vrot.lane.b32.xlu0 %v324_v44, %s1355_s2  ;;  %v325_v52 = vmul.f32 %v324_v44, %v1465_v0 }
 0x651   :  { %v365_v45 = vpop.permute.xlu1 %364 }
 0x652   :  { %v367_v46 = vmul.f32 %v365_v45, %v361_v42 }
 0x653   :  { %v328_v47 = vpop.permute.xlu0 %327 }
 0x654   :  { %v330_v48 = vmul.f32 %v328_v47, %v324_v44  ;;  %369 = vrot.lane.b32.xlu1 %v367_v46, %s1355_s2 }
 0x656   :  { %332 = vrot.lane.b32.xlu0 %v330_v48, %s1355_s2 }
 0x6c6   :  { %v370_v50 = vpop.permute.xlu1 %369 }
 0x6c7   :  { %v1494_v51 = vadd.f32 %v370_v50, %v362_v49 }
 0x6c8   :  { %v333_v53 = vpop.permute.xlu0 %332 }
 0x6c9   :  { %1182 = vtanh.f32 %v1494_v51  ;;  %v1498_v54 = vadd.f32 %v333_v53, %v325_v52 }
 0x6cb   :  { %1184 = vtanh.f32 %v1498_v54 }
 0x6d6   :  { %v1183_v55 = vpop.eup %1182 }
 0x6d7   :  { %375 = vrot.lane.b32.xlu1 %v1183_v55, %s1355_s2 }
 0x6d8   :  { %v1185_v56 = vpop.eup %1184 }
 0x6d9   :  { %338 = vrot.lane.b32.xlu0 %v1185_v56, %s1355_s2  ;;  %v580_v56 = vld [vmem:[%s579_s18] sm:$0x1] }
 0x749   :  { %v376_v57 = vpop.permute.xlu1 %375 }
 0x74a   :  { %v378_v58 = vmul.f32 %v376_v57, %v361_v42  ;;  %v582_v57 = vrot.slane %v580_v56, 7 }
 0x74b   :  { %v339_v59 = vpop.permute.xlu0 %338 }
 0x74c   :  { %v379_v60 = vpack.c.bf16 %v378_v58, %v378_v58  ;;  %v341_v61 = vmul.f32 %v339_v59, %v324_v44  ;;  %v577_v58 = vld [vmem:[%s576_s19] sm:$0x1] }
 0x74d   :  { %v584_v59 = vsel %vm76_vm0, %v577_v58, %v582_v57 }
 0x74e   :  { %v342_v62 = vpack.c.bf16 %v341_v61, %v341_v61  ;;  %381 = vrot.lane.b32.xlu0 %v379_v60, %s1357_s29 }
 0x750   :  { %384 = vrot.lane.b32.xlu1 %v342_v62, %s1358_s7 }
 0x7c0   :  { %v382_v63 = vpop.permute.xlu0 %381 }
 0x7c2   :  { %v385_v0 = vpop.permute.xlu1 %384 }
 0x7c3   :  { %v388_v1 = vsel %vm108_vm2, %v382_v63, %v385_v0 }
 0x7c4   :  { %1097 = vmatmul.mubr.msk.bf16.vlgmr.msra.gmra.mxu0 %vm152_vm3, %v388_v1 }
 0x7c5   :  { %632 = vmatpush1.bf16.msra.mxu0 %v1402_v18  ;;  %655 = vmatprep.mubr.bf16.mxu0 %v1356_v26 }
 0x7c6   :  { %633 = vmatprep.subr.bf16.mxu0 %v1404_v19 }
 0x7c9   :  { %634 = vmatpush1.bf16.msra.mxu0 %v1409_v20 }
 0x7ca   :  { %635 = vmatprep.subr.bf16.mxu0 %v1413_v21 }
 0x7cd   :  { %636 = vmatpush1.bf16.msra.mxu0 %v1417_v22 }
 0x7ce   :  { %637 = vmatprep.subr.bf16.mxu0 %v1421_v24 }
 0x7d1   :  { %638 = vmatpush1.bf16.msra.mxu0 %v1426_v25 }
 0x7d2   :  { %863 = vmatprep.subr.bf16.mxu0 %v1400_v17 }
 0x884   :  { %v425_v6 = vpop.f32.mrf.mxu0 }
 0x885   :  { %v469_v7 = vadd.f32 %v468_v5, %v425_v6 }
 0x886   :  { %v427_v9 = vpop.f32.mrf.mxu0 }
 0x887   :  { %v1101_v10 = vmul.f32 -1.442695, %v469_v7  ;;  %v432_v11 = vadd.f32 %v1450_v37, %v427_v9 }
 0x888   :  { %v429_v12 = vpop.f32.mrf.mxu0 }
 0x889   :  { %1186 = vpow2.f32 %v1101_v10  ;;  %v1098_v13 = vmul.f32 -1.442695, %v432_v11 }
 0x88a   :  { %v430_v14 = vpop.f32.mrf.mxu0 }
 0x88b   :  { %1188 = vpow2.f32 %v1098_v13 }
 0x88c   :  { %1190 = vtanh.f32 %v469_v7 }
 0x896   :  { %v1187_v15 = vpop.eup %1186 }
 0x897   :  { %v473_v16 = vadd.f32 1.0, %v1187_v15 }
 0x898   :  { %v1189_v23 = vpop.eup %1188 }
 0x899   :  { %1192 = vrcp.f32 %v473_v16  ;;  %v436_v27 = vadd.f32 1.0, %v1189_v23  ;;  %v1191_v28 = vpop.eup %1190 }
 0x89a   :  { %1194 = vtanh.f32 %v432_v11 }
 0x89b   :  { %1196 = vrcp.f32 %v436_v27 }
 0x8a6   :  { %v1193_v29 = vpop.eup %1192 }
 0x8a7   :  { %v1195_v30 = vpop.eup %1194  ;;  %v477_v31 = vsel %vm66_vm1, %v1193_v29, %v1191_v28 }
 0x8a8   :  { %v1197_v32 = vpop.eup %1196  ;;  %480 = vrot.lane.b32.xlu1 %v477_v31, %s1355_s2  ;;  %v478_v39 = vmul.f32 %v477_v31, %v1494_v51 }
 0x8a9   :  { %v440_v33 = vsel %vm66_vm1, %v1197_v32, %v1195_v30 }
 0x8aa   :  { %443 = vrot.lane.b32.xlu0 %v440_v33, %s1355_s2  ;;  %v441_v42 = vmul.f32 %v440_v33, %v1498_v54 }
 0x91a   :  { %v481_v34 = vpop.permute.xlu1 %480 }
 0x91b   :  { %v483_v35 = vmul.f32 %v481_v34, %v477_v31 }
 0x91c   :  { %v444_v36 = vpop.permute.xlu0 %443 }
 0x91d   :  { %v446_v38 = vmul.f32 %v444_v36, %v440_v33  ;;  %485 = vrot.lane.b32.xlu1 %v483_v35, %s1355_s2 }
 0x91f   :  { %448 = vrot.lane.b32.xlu0 %v446_v38, %s1355_s2 }
 0x98f   :  { %v486_v40 = vpop.permute.xlu1 %485 }
 0x990   :  { %v1527_v41 = vadd.f32 %v486_v40, %v478_v39 }
 0x991   :  { %v449_v43 = vpop.permute.xlu0 %448 }
 0x992   :  { %1198 = vtanh.f32 %v1527_v41  ;;  %v1531_v44 = vadd.f32 %v449_v43, %v441_v42 }
 0x994   :  { %1200 = vtanh.f32 %v1531_v44 }
 0x99f   :  { %v1199_v45 = vpop.eup %1198 }
 0x9a0   :  { %491 = vrot.lane.b32.xlu1 %v1199_v45, %s1355_s2  ;;  %v696_v45 = vld [vmem:[%s695_s22] sm:$0x1] }
 0x9a1   :  { %v1201_v46 = vpop.eup %1200 }
 0x9a2   :  { %454 = vrot.lane.b32.xlu0 %v1201_v46, %s1355_s2  ;;  %v698_v46 = vrot.slane %v696_v45, 7 }
 0xa12   :  { %v492_v47 = vpop.permute.xlu1 %491 }
 0xa13   :  { %v494_v48 = vmul.f32 %v492_v47, %v477_v31  ;;  %v693_v47 = vld [vmem:[%s692_s23] sm:$0x1] }
 0xa14   :  { %v455_v49 = vpop.permute.xlu0 %454 }
 0xa15   :  { %v495_v50 = vpack.c.bf16 %v494_v48, %v494_v48  ;;  %v457_v51 = vmul.f32 %v455_v49, %v440_v33  ;;  %v700_v48 = vsel %vm76_vm0, %v693_v47, %v698_v46 }
 0xa17   :  { %v458_v52 = vpack.c.bf16 %v457_v51, %v457_v51  ;;  %497 = vrot.lane.b32.xlu0 %v495_v50, %s1357_s29 }
 0xa19   :  { %500 = vrot.lane.b32.xlu1 %v458_v52, %s1358_s7 }
 0xa89   :  { %v498_v53 = vpop.permute.xlu0 %497 }
 0xa8b   :  { %v501_v54 = vpop.permute.xlu1 %500 }
 0xa8c   :  { %v504_v55 = vsel %vm108_vm2, %v498_v53, %v501_v54 }
 0xa8d   :  { %1102 = vmatmul.mubr.msk.bf16.vlgmr.msra.gmra.mxu1 %vm152_vm3, %v504_v55 }
 0xa8e   :  { %748 = vmatpush1.bf16.msra.mxu1 %v1402_v18  ;;  %771 = vmatprep.mubr.bf16.mxu1 %v1356_v26 }
 0xa8f   :  { %749 = vmatprep.subr.bf16.mxu1 %v1404_v19 }
 0xa92   :  { %750 = vmatpush1.bf16.msra.mxu1 %v1409_v20 }
 0xa93   :  { %751 = vmatprep.subr.bf16.mxu1 %v1413_v21 }
 0xa96   :  { %752 = vmatpush1.bf16.msra.mxu1 %v1417_v22 }
 0xa97   :  { %753 = vmatprep.subr.bf16.mxu1 %v1421_v24 }
 0xa9a   :  { %754 = vmatpush1.bf16.msra.mxu1 %v1426_v25 }
 0xa9b   :  { %979 = vmatprep.subr.bf16.mxu1 %v1400_v17 }
 0xb4d   :  { %v541_v60 = vpop.f32.mrf.mxu1 }
 0xb4e   :  { %v585_v61 = vadd.f32 %v584_v59, %v541_v60 }
 0xb4f   :  { %v543_v62 = vpop.f32.mrf.mxu1 }
 0xb50   :  { %v1106_v63 = vmul.f32 -1.442695, %v585_v61  ;;  %v548_v0 = vadd.f32 %v1450_v37, %v543_v62 }
 0xb51   :  { %v545_v1 = vpop.f32.mrf.mxu1 }
 0xb52   :  { %1202 = vpow2.f32 %v1106_v63  ;;  %v1103_v2 = vmul.f32 -1.442695, %v548_v0 }
 0xb53   :  { %v546_v3 = vpop.f32.mrf.mxu1 }
 0xb54   :  { %1204 = vpow2.f32 %v1103_v2 }
 0xb55   :  { %1206 = vtanh.f32 %v585_v61 }
 0xb5f   :  { %v1203_v17 = vpop.eup %1202 }
 0xb60   :  { %v589_v4 = vadd.f32 1.0, %v1203_v17 }
 0xb61   :  { %v1205_v5 = vpop.eup %1204 }
 0xb62   :  { %1208 = vrcp.f32 %v589_v4  ;;  %v552_v6 = vadd.f32 1.0, %v1205_v5  ;;  %v1207_v7 = vpop.eup %1206 }
 0xb63   :  { %1210 = vtanh.f32 %v548_v0 }
 0xb64   :  { %1212 = vrcp.f32 %v552_v6 }
 0xb6f   :  { %v1209_v9 = vpop.eup %1208 }
 0xb70   :  { %v1211_v10 = vpop.eup %1210  ;;  %v593_v11 = vsel %vm66_vm1, %v1209_v9, %v1207_v7 }
 0xb71   :  { %v1213_v12 = vpop.eup %1212  ;;  %596 = vrot.lane.b32.xlu1 %v593_v11, %s1355_s2  ;;  %v594_v27 = vmul.f32 %v593_v11, %v1527_v41 }
 0xb72   :  { %v556_v13 = vsel %vm66_vm1, %v1213_v12, %v1211_v10 }
 0xb73   :  { %559 = vrot.lane.b32.xlu0 %v556_v13, %s1355_s2  ;;  %v557_v30 = vmul.f32 %v556_v13, %v1531_v44 }
 0xbe3   :  { %v597_v14 = vpop.permute.xlu1 %596 }
 0xbe4   :  { %v599_v15 = vmul.f32 %v597_v14, %v593_v11 }
 0xbe5   :  { %v560_v16 = vpop.permute.xlu0 %559 }
 0xbe6   :  { %v562_v23 = vmul.f32 %v560_v16, %v556_v13  ;;  %601 = vrot.lane.b32.xlu1 %v599_v15, %s1355_s2 }
 0xbe8   :  { %564 = vrot.lane.b32.xlu0 %v562_v23, %s1355_s2 }
 0xc58   :  { %v602_v28 = vpop.permute.xlu1 %601 }
 0xc59   :  { %v1560_v29 = vadd.f32 %v602_v28, %v594_v27 }
 0xc5a   :  { %v565_v31 = vpop.permute.xlu0 %564 }
 0xc5b   :  { %1214 = vtanh.f32 %v1560_v29  ;;  %v1564_v32 = vadd.f32 %v565_v31, %v557_v30 }
 0xc5d   :  { %1216 = vtanh.f32 %v1564_v32 }
 0xc68   :  { %v1215_v33 = vpop.eup %1214 }
 0xc69   :  { %607 = vrot.lane.b32.xlu1 %v1215_v33, %s1355_s2  ;;  %v812_v33 = vld [vmem:[%s811_s25] sm:$0x1] }
 0xc6a   :  { %v1217_v34 = vpop.eup %1216 }
 0xc6b   :  { %570 = vrot.lane.b32.xlu0 %v1217_v34, %s1355_s2  ;;  %v814_v34 = vrot.slane %v812_v33, 7 }
 0xcdb   :  { %v608_v35 = vpop.permute.xlu1 %607 }
 0xcdc   :  { %v610_v36 = vmul.f32 %v608_v35, %v593_v11 }
 0xcdd   :  { %v571_v38 = vpop.permute.xlu0 %570 }
 0xcde   :  { %v611_v39 = vpack.c.bf16 %v610_v36, %v610_v36  ;;  %v573_v40 = vmul.f32 %v571_v38, %v556_v13 }
 0xce0   :  { %v574_v41 = vpack.c.bf16 %v573_v40, %v573_v40  ;;  %613 = vrot.lane.b32.xlu0 %v611_v39, %s1357_s29 }
 0xce2   :  { %616 = vrot.lane.b32.xlu1 %v574_v41, %s1358_s7 }
 0xd52   :  { %v614_v42 = vpop.permute.xlu0 %613 }
 0xd54   :  { %v617_v43 = vpop.permute.xlu1 %616 }
 0xd55   :  { %v620_v44 = vsel %vm108_vm2, %v614_v42, %v617_v43 }
 0xd56   :  { %1107 = vmatmul.mubr.msk.bf16.vlgmr.msra.gmra.mxu0 %vm152_vm3, %v620_v44 }
 0xd57   :  { %864 = vmatpush1.bf16.msra.mxu0 %v1402_v18  ;;  %887 = vmatprep.mubr.bf16.mxu0 %v1356_v26 }
 0xd58   :  { %865 = vmatprep.subr.bf16.mxu0 %v1404_v19 }
 0xd5b   :  { %866 = vmatpush1.bf16.msra.mxu0 %v1409_v20 }
 0xd5c   :  { %867 = vmatprep.subr.bf16.mxu0 %v1413_v21 }
 0xd5f   :  { %868 = vmatpush1.bf16.msra.mxu0 %v1417_v22 }
 0xd60   :  { %869 = vmatprep.subr.bf16.mxu0 %v1421_v24 }
 0xd63   :  { %870 = vmatpush1.bf16.msra.mxu0 %v1426_v25 }
 0xe16   :  { %v657_v49 = vpop.f32.mrf.mxu0 }
 0xe17   :  { %v701_v50 = vadd.f32 %v700_v48, %v657_v49 }
 0xe18   :  { %v659_v51 = vpop.f32.mrf.mxu0 }
 0xe19   :  { %v1111_v52 = vmul.f32 -1.442695, %v701_v50  ;;  %v664_v53 = vadd.f32 %v1450_v37, %v659_v51 }
 0xe1a   :  { %v661_v54 = vpop.f32.mrf.mxu0 }
 0xe1b   :  { %1218 = vpow2.f32 %v1111_v52  ;;  %v1108_v55 = vmul.f32 -1.442695, %v664_v53 }
 0xe1c   :  { %v662_v56 = vpop.f32.mrf.mxu0 }
 0xe1d   :  { %1220 = vpow2.f32 %v1108_v55 }
 0xe1e   :  { %1222 = vtanh.f32 %v701_v50 }
 0xe28   :  { %v1219_v57 = vpop.eup %1218 }
 0xe29   :  { %v705_v58 = vadd.f32 1.0, %v1219_v57 }
 0xe2a   :  { %v1221_v59 = vpop.eup %1220 }
 0xe2b   :  { %1224 = vrcp.f32 %v705_v58  ;;  %v668_v60 = vadd.f32 1.0, %v1221_v59  ;;  %v1223_v61 = vpop.eup %1222 }
 0xe2c   :  { %1226 = vtanh.f32 %v664_v53 }
 0xe2d   :  { %1228 = vrcp.f32 %v668_v60 }
 0xe38   :  { %v1225_v62 = vpop.eup %1224 }
 0xe39   :  { %v1227_v63 = vpop.eup %1226  ;;  %v709_v0 = vsel %vm66_vm1, %v1225_v62, %v1223_v61 }
 0xe3a   :  { %v1229_v1 = vpop.eup %1228  ;;  %712 = vrot.lane.b32.xlu1 %v709_v0, %s1355_s2  ;;  %v710_v6 = vmul.f32 %v709_v0, %v1560_v29 }
 0xe3b   :  { %v672_v2 = vsel %vm66_vm1, %v1229_v1, %v1227_v63 }
 0xe3c   :  { %675 = vrot.lane.b32.xlu0 %v672_v2, %s1355_s2  ;;  %v673_v10 = vmul.f32 %v672_v2, %v1564_v32 }
 0xeac   :  { %v713_v3 = vpop.permute.xlu1 %712 }
 0xead   :  { %v715_v17 = vmul.f32 %v713_v3, %v709_v0 }
 0xeae   :  { %v676_v4 = vpop.permute.xlu0 %675 }
 0xeaf   :  { %v678_v5 = vmul.f32 %v676_v4, %v672_v2  ;;  %717 = vrot.lane.b32.xlu1 %v715_v17, %s1355_s2  ;;  %v928_v4 = vld [vmem:[%s927_s28] sm:$0x1] }
 0xeb1   :  { %680 = vrot.lane.b32.xlu0 %v678_v5, %s1355_s2  ;;  %v930_v5 = vrot.slane %v928_v4, 7 }
 0xf21   :  { %v718_v7 = vpop.permute.xlu1 %717 }
 0xf22   :  { %v1592_v9 = vadd.f32 %v718_v7, %v710_v6  ;;  %v925_v6 = vld [vmem:[%s924_s30] sm:$0x1] }
 0xf23   :  { %v681_v11 = vpop.permute.xlu0 %680  ;;  %v932_v7 = vsel %vm76_vm0, %v925_v6, %v930_v5 }
 0xf24   :  { %1230 = vtanh.f32 %v1592_v9  ;;  %v1596_v12 = vadd.f32 %v681_v11, %v673_v10 }
 0xf26   :  { %1232 = vtanh.f32 %v1596_v12 }
 0xf31   :  { %v1231_v13 = vpop.eup %1230 }
 0xf32   :  { %723 = vrot.lane.b32.xlu1 %v1231_v13, %s1355_s2 }
 0xf33   :  { %v1233_v14 = vpop.eup %1232 }
 0xf34   :  { %686 = vrot.lane.b32.xlu0 %v1233_v14, %s1355_s2 }
 0xfa4   :  { %v724_v15 = vpop.permute.xlu1 %723 }
 0xfa5   :  { %v726_v16 = vmul.f32 %v724_v15, %v709_v0 }
 0xfa6   :  { %v687_v23 = vpop.permute.xlu0 %686 }
 0xfa7   :  { %v727_v27 = vpack.c.bf16 %v726_v16, %v726_v16  ;;  %v689_v28 = vmul.f32 %v687_v23, %v672_v2 }
 0xfa9   :  { %v690_v29 = vpack.c.bf16 %v689_v28, %v689_v28  ;;  %729 = vrot.lane.b32.xlu0 %v727_v27, %s1357_s29 }
 0xfab   :  { %732 = vrot.lane.b32.xlu1 %v690_v29, %s1358_s7 }
0x101b   :  { %v730_v30 = vpop.permute.xlu0 %729 }
0x101d   :  { %v733_v31 = vpop.permute.xlu1 %732 }
0x101e   :  { %v736_v32 = vsel %vm108_vm2, %v730_v30, %v733_v31 }
0x101f   :  { %1112 = vmatmul.mubr.msk.bf16.vlgmr.msra.gmra.mxu1 %vm152_vm3, %v736_v32 }
0x1020   :  { %980 = vmatpush1.bf16.msra.mxu1 %v1402_v18  ;;  %1003 = vmatprep.mubr.bf16.mxu1 %v1356_v26  ;;  %v809_v18 = vld [vmem:[%s808_s1] sm:$0x1] }
0x1021   :  { %981 = vmatprep.subr.bf16.mxu1 %v1404_v19  ;;  %v816_v26 = vsel %vm76_vm0, %v809_v18, %v814_v34 }
0x1024   :  { %982 = vmatpush1.bf16.msra.mxu1 %v1409_v20 }
0x1025   :  { %983 = vmatprep.subr.bf16.mxu1 %v1413_v21 }
0x1028   :  { %984 = vmatpush1.bf16.msra.mxu1 %v1417_v22 }
0x1029   :  { %985 = vmatprep.subr.bf16.mxu1 %v1421_v24 }
0x102c   :  { %986 = vmatpush1.bf16.msra.mxu1 %v1426_v25 }
0x10df   :  { %v773_v19 = vpop.f32.mrf.mxu1 }
0x10e0   :  { %v817_v35 = vadd.f32 %v816_v26, %v773_v19 }
0x10e1   :  { %v775_v20 = vpop.f32.mrf.mxu1 }
0x10e2   :  { %v1116_v36 = vmul.f32 -1.442695, %v817_v35  ;;  %v780_v21 = vadd.f32 %v1450_v37, %v775_v20 }
0x10e3   :  { %v777_v22 = vpop.f32.mrf.mxu1 }
0x10e4   :  { %1234 = vpow2.f32 %v1116_v36  ;;  %v1113_v24 = vmul.f32 -1.442695, %v780_v21 }
0x10e5   :  { %v778_v38 = vpop.f32.mrf.mxu1 }
0x10e6   :  { %1236 = vpow2.f32 %v1113_v24 }
0x10e7   :  { %1238 = vtanh.f32 %v817_v35 }
0x10f1   :  { %v1235_v25 = vpop.eup %1234 }
0x10f2   :  { %v821_v39 = vadd.f32 1.0, %v1235_v25 }
0x10f3   :  { %v1237_v40 = vpop.eup %1236 }
0x10f4   :  { %1240 = vrcp.f32 %v821_v39  ;;  %v784_v41 = vadd.f32 1.0, %v1237_v40  ;;  %v1239_v42 = vpop.eup %1238 }
0x10f5   :  { %1242 = vtanh.f32 %v780_v21 }
0x10f6   :  { %1244 = vrcp.f32 %v784_v41 }
0x1101   :  { %v1241_v43 = vpop.eup %1240 }
0x1102   :  { %v1243_v44 = vpop.eup %1242  ;;  %v825_v45 = vsel %vm66_vm1, %v1241_v43, %v1239_v42 }
0x1103   :  { %v1245_v46 = vpop.eup %1244  ;;  %828 = vrot.lane.b32.xlu1 %v825_v45, %s1355_s2  ;;  %v826_v52 = vmul.f32 %v825_v45, %v1592_v9 }
0x1104   :  { %v788_v47 = vsel %vm66_vm1, %v1245_v46, %v1243_v44 }
0x1105   :  { %791 = vrot.lane.b32.xlu0 %v788_v47, %s1355_s2  ;;  %v789_v55 = vmul.f32 %v788_v47, %v1596_v12 }
0x1175   :  { %v829_v48 = vpop.permute.xlu1 %828 }
0x1176   :  { %v831_v49 = vmul.f32 %v829_v48, %v825_v45 }
0x1177   :  { %v792_v50 = vpop.permute.xlu0 %791 }
0x1178   :  { %v794_v51 = vmul.f32 %v792_v50, %v788_v47  ;;  %833 = vrot.lane.b32.xlu1 %v831_v49, %s1355_s2 }
0x117a   :  { %796 = vrot.lane.b32.xlu0 %v794_v51, %s1355_s2 }
0x11ea   :  { %v834_v53 = vpop.permute.xlu1 %833 }
0x11eb   :  { %v836_v54 = vadd.f32 %v834_v53, %v826_v52 }
0x11ec   :  { %v797_v56 = vpop.permute.xlu0 %796 }
0x11ed   :  { %1246 = vtanh.f32 %v836_v54  ;;  %v799_v57 = vadd.f32 %v797_v56, %v789_v55 }
0x11ef   :  { %1248 = vtanh.f32 %v799_v57 }
0x11fa   :  { %v1247_v58 = vpop.eup %1246 }
0x11fb   :  { %839 = vrot.lane.b32.xlu1 %v1247_v58, %s1355_s2 }
0x11fc   :  { %v1249_v59 = vpop.eup %1248 }
0x11fd   :  { %802 = vrot.lane.b32.xlu0 %v1249_v59, %s1355_s2 }
0x126d   :  { %v840_v60 = vpop.permute.xlu1 %839 }
0x126e   :  { %v842_v61 = vmul.f32 %v840_v60, %v825_v45 }
0x126f   :  { %v803_v62 = vpop.permute.xlu0 %802 }
0x1270   :  { %v843_v63 = vpack.c.bf16 %v842_v61, %v842_v61  ;;  %v805_v0 = vmul.f32 %v803_v62, %v788_v47 }
0x1272   :  { %v806_v1 = vpack.c.bf16 %v805_v0, %v805_v0  ;;  %845 = vrot.lane.b32.xlu0 %v843_v63, %s1357_s29 }
0x1274   :  { %848 = vrot.lane.b32.xlu1 %v806_v1, %s1358_s7 }
0x12e4   :  { %v846_v2 = vpop.permute.xlu0 %845 }
0x12e6   :  { %v849_v3 = vpop.permute.xlu1 %848 }
0x12e7   :  { %v852_v17 = vsel %vm108_vm2, %v846_v2, %v849_v3 }
0x12e8   :  { %1117 = vmatmul.mubr.msk.bf16.vlgmr.msra.gmra.mxu0 %vm152_vm3, %v852_v17 }
0x13a8   :  { %v889_v9 = vpop.f32.mrf.mxu0 }
0x13a9   :  { %v933_v10 = vadd.f32 %v932_v7, %v889_v9 }
0x13aa   :  { %v891_v11 = vpop.f32.mrf.mxu0 }
0x13ab   :  { %v1121_v12 = vmul.f32 -1.442695, %v933_v10  ;;  %v896_v13 = vadd.f32 %v1450_v37, %v891_v11 }
0x13ac   :  { %v893_v14 = vpop.f32.mrf.mxu0 }
0x13ad   :  { %1250 = vpow2.f32 %v1121_v12  ;;  %v1118_v15 = vmul.f32 -1.442695, %v896_v13 }
0x13ae   :  { %v894_v16 = vpop.f32.mrf.mxu0 }
0x13af   :  { %1252 = vpow2.f32 %v1118_v15 }
0x13b0   :  { %1254 = vtanh.f32 %v933_v10 }
0x13ba   :  { %v1251_v23 = vpop.eup %1250 }
0x13bb   :  { %v937_v27 = vadd.f32 1.0, %v1251_v23 }
0x13bc   :  { %v1253_v28 = vpop.eup %1252 }
0x13bd   :  { %1256 = vrcp.f32 %v937_v27  ;;  %v900_v29 = vadd.f32 1.0, %v1253_v28  ;;  %v1255_v30 = vpop.eup %1254 }
0x13be   :  { %1258 = vtanh.f32 %v896_v13 }
0x13bf   :  { %1260 = vrcp.f32 %v900_v29 }
0x13ca   :  { %v1257_v31 = vpop.eup %1256 }
0x13cb   :  { %v1259_v32 = vpop.eup %1258  ;;  %v941_v33 = vsel %vm66_vm1, %v1257_v31, %v1255_v30 }
0x13cc   :  { %v1261_v34 = vpop.eup %1260  ;;  %944 = vrot.lane.b32.xlu1 %v941_v33, %s1355_s2  ;;  %v942_v36 = vmul.f32 %v941_v33, %v836_v54 }
0x13cd   :  { %v904_v18 = vsel %vm66_vm1, %v1261_v34, %v1259_v32 }
0x13ce   :  { %907 = vrot.lane.b32.xlu0 %v904_v18, %s1355_s2  ;;  %v905_v24 = vmul.f32 %v904_v18, %v799_v57 }
0x143e   :  { %v945_v26 = vpop.permute.xlu1 %944 }
0x143f   :  { %v947_v19 = vmul.f32 %v945_v26, %v941_v33 }
0x1440   :  { %v908_v35 = vpop.permute.xlu0 %907 }
0x1441   :  { %v910_v20 = vmul.f32 %v908_v35, %v904_v18  ;;  %949 = vrot.lane.b32.xlu1 %v947_v19, %s1355_s2 }
0x1443   :  { %912 = vrot.lane.b32.xlu0 %v910_v20, %s1355_s2 }
0x14b3   :  { %v950_v21 = vpop.permute.xlu1 %949 }
0x14b4   :  { %v952_v22 = vadd.f32 %v950_v21, %v942_v36 }
0x14b5   :  { %v913_v38 = vpop.permute.xlu0 %912 }
0x14b6   :  { %1262 = vtanh.f32 %v952_v22  ;;  %v915_v25 = vadd.f32 %v913_v38, %v905_v24 }
0x14b8   :  { %1264 = vtanh.f32 %v915_v25 }
0x14c3   :  { %v1263_v39 = vpop.eup %1262 }
0x14c4   :  { %955 = vrot.lane.b32.xlu1 %v1263_v39, %s1355_s2 }
0x14c5   :  { %v1265_v40 = vpop.eup %1264 }
0x14c6   :  { %918 = vrot.lane.b32.xlu0 %v1265_v40, %s1355_s2 }
0x1536   :  { %v956_v41 = vpop.permute.xlu1 %955 }
0x1537   :  { %v958_v42 = vmul.f32 %v956_v41, %v941_v33 }
0x1538   :  { %v919_v43 = vpop.permute.xlu0 %918 }
0x1539   :  { %v959_v44 = vpack.c.bf16 %v958_v42, %v958_v42  ;;  %v921_v45 = vmul.f32 %v919_v43, %v904_v18 }
0x153b   :  { %v922_v46 = vpack.c.bf16 %v921_v45, %v921_v45  ;;  %961 = vrot.lane.b32.xlu0 %v959_v44, %s1357_s29 }
0x153d   :  { %964 = vrot.lane.b32.xlu1 %v922_v46, %s1358_s7 }
0x15ad   :  { %v962_v47 = vpop.permute.xlu0 %961 }
0x15af   :  { %v965_v48 = vpop.permute.xlu1 %964 }
0x15b0   :  { %v968_v49 = vsel %vm108_vm2, %v962_v47, %v965_v48 }
0x15b1   :  { %1122 = vmatmul.mubr.msk.bf16.vlgmr.msra.gmra.mxu1 %vm152_vm3, %v968_v49 }
0x1671   :  { %v1005_v50 = vpop.f32.mrf.mxu1 }
0x1673   :  { %v1006_v51 = vpop.f32.mrf.mxu1 }
0x1674   :  { %v1011_v52 = vadd.f32 %v1450_v37, %v1006_v51 }
0x1675   :  { %v1008_v53 = vpop.f32.mrf.mxu1 }
0x1676   :  { %v1123_v54 = vmul.f32 -1.442695, %v1011_v52 }
0x1677   :  { %v1009_v55 = vpop.f32.mrf.mxu1 }
0x1678   :  { %1266 = vpow2.f32 %v1123_v54 }
0x1679   :  { %1268 = vtanh.f32 %v1011_v52 }
0x1685   :  { %v1267_v56 = vpop.eup %1266 }
0x1686   :  { %v1015_v57 = vadd.f32 1.0, %v1267_v56  ;;  %v1269_v58 = vpop.eup %1268 }
0x1688   :  { %1270 = vrcp.f32 %v1015_v57 }
0x1695   :  { %v1271_v59 = vpop.eup %1270 }
0x1696   :  { %v1019_v60 = vsel %vm66_vm1, %v1271_v59, %v1269_v58 }
0x1697   :  { %1022 = vrot.lane.b32.xlu0 %v1019_v60, %s1355_s2  ;;  %v1020_v37 = vmul.f32 %v1019_v60, %v915_v25 }
0x1709   :  { %v1023_v61 = vpop.permute.xlu0 %1022 }
0x170a   :  { %v1025_v62 = vmul.f32 %v1023_v61, %v1019_v60 }
0x170c   :  { %1027 = vrot.lane.b32.xlu1 %v1025_v62, %s1355_s2 }
0x177e   :  { %v1028_v63 = vpop.permute.xlu1 %1027 }
0x177f   :  { %v1030_v0 = vadd.f32 %v1028_v63, %v1020_v37 }
0x1781   :  { %1272 = vtanh.f32 %v1030_v0 }
0x178e   :  { %v1273_v1 = vpop.eup %1272 }
0x178f   :  { %1033 = vrot.lane.b32.xlu0 %v1273_v1, %s1355_s2 }
0x1801   :  { %v1034_v2 = vpop.permute.xlu0 %1033 }
0x1802   :  { %v1036_v3 = vmul.f32 %v1034_v2, %v1019_v60 }
0x1804   :  { %1038 = vrot.lane.b32.xlu1 %v1036_v3, %s1357_s29 }
0x1876   :  { %v1039_v8 = vpop.permute.xlu1 %1038 }
0x1877   :  { %1042 = vst.msk [vmem:[#allocation9] sm:$0x3] %vm1041_vm4, %v1039_v8 }
0x1878   :  { %1333 = shalt.err (!%p1330_p0)
}
0x1879   :  { %1052 = dma.vmem_to_hbm [thread:$0]  %s1050_s5, 32, %s1660_s3, [#allocation4]  }
0x187a   :  { %1348 = dma.done.wait [#allocation4], 32  }
0x187b   :  { %1349 = vsyncadd [#allocation4], 4294967264 }
0x187c   :  { %1056 = vsyncpa [#allocation3], 1 }
0x187d   :  { %1057 = vsyncpa [#allocation8], 1 }
0x187e   :  { %1058 = vsyncpa [#allocation4], 1 }
0x187f   :  { %1059 = vsyncpa [#allocation5], 1 }

</bundles_post_ra>
